<compile_context>
chip_gen: v5e
topology: v5e:2x2
jax: 0.10.0
libtpu: 0.0.40
codegen_flags: <defaults>
</compile_context>

<pallas_src>
import numpy as np

import jax
import jax.numpy as jnp
from jax.experimental import pallas as pl
from jax.experimental.pallas import tpu as pltpu


LANE = 128      # pad Cout up to a multiple of the 128-lane width (lane-dense stores/MXU)
W_ALIGN = 8     # sublane-aligned left border width of the padded scratches


def _round_up(x, m):
    return (x + m - 1) // m * m


def down_block_kernel(x_ref, w1_ref, b1_ref, w2_ref, b2_ref, o_ref,
                      pad1, pad2, acc):
    # x_ref : (1, 4, Hp, Wp, Cin) -- axis 1 = the 4 positions of each 2x2 pool window
    # w1_ref: (9, Cin, Cp)   b1_ref: (1, Cp)      (Cp = Cout padded to a multiple of 128)
    # w2_ref: (9, Cp, Cp)    b2_ref: (1, Cp)
    # o_ref : (1, Hp, Wp, Cp)
    # pad1  : (Hp+2, Wp+16, Cin) VMEM scratch (zero-bordered pooled input,  interior @ col 8)
    # pad2  : (Hp+2, Wp+16, Cp)  VMEM scratch (zero-bordered conv1 output,  interior @ col 8)
    # acc   : (Hp*Wp, Cp) f32 VMEM accumulator, reused by both convs
    _, _, Hp, Wp, Cin = x_ref.shape
    Cp = o_ref.shape[-1]

    # ---- 2x2 max pool: elementwise max over the 4 exposed window positions ----------
    # (leading-axis indexing -> free addressing, no strided/sublane work)
    pooled = jnp.maximum(jnp.maximum(x_ref[0, 0], x_ref[0, 1]),
                         jnp.maximum(x_ref[0, 2], x_ref[0, 3]))        # (Hp, Wp, Cin)

    def zero_border(pad):
        # Refresh only the border the taps actually read: top/bottom row planes plus two
        # sublane-aligned 8-wide column blocks (cols [0:8] and [8+Wp:16+Wp]); the
        # interior is fully overwritten every step.  Per-step (not pid==0 / SMEM-flag
        # gated) so it stays correct when the batch axis is sharded across TensorCores.
        Wtot, C = pad.shape[1], pad.shape[2]
        zrow = jnp.zeros((1, Wtot, C), pad.dtype)
        pad[0:1, :, :] = zrow
        pad[Hp + 1:Hp + 2, :, :] = zrow
        zcol = jnp.zeros((Hp + 2, W_ALIGN, C), pad.dtype)
        pad[:, 0:W_ALIGN, :] = zcol
        pad[:, W_ALIGN + Wp:W_ALIGN + Wp + W_ALIGN, :] = zcol

    def conv3x3(pad, w_ref, b_ref):
        # 9 accumulating K=C matmuls (no materialized im2col).  All slice starts are
        # static; the interior write and the central dx=1 tap start at sublane offset 8.
        C = pad.shape[2]
        for k in range(9):
            dy, dx = divmod(k, 3)
            w0 = (W_ALIGN - 1) + dx                     # 7 / 8 / 9
            lhs = pad[dy:dy + Hp, w0:w0 + Wp, :].reshape(Hp * Wp, C)
            tap = jnp.dot(lhs, w_ref[k], preferred_element_type=jnp.float32)
            if k == 0:
                acc[...] = tap + b_ref[...]
            else:
                acc[...] += tap

    # ---- conv1: pooled -> pad1 -> acc ------------------------------------------------
    zero_border(pad1)
    pad1[1:Hp + 1, W_ALIGN:W_ALIGN + Wp, :] = pooled.astype(pad1.dtype)
    conv3x3(pad1, w1_ref, b1_ref)

    # ---- conv2: ReLU(conv1) written straight into pad2's interior (no h1 round-trip) -
    zero_border(pad2)
    pad2[1:Hp + 1, W_ALIGN:W_ALIGN + Wp, :] = (
        jnp.maximum(acc[...], 0.0).astype(pad2.dtype).reshape(Hp, Wp, Cp))
    conv3x3(pad2, w2_ref, b2_ref)

    # Lane-dense (Cp % 128 == 0) unmasked output store.
    o_ref[0] = jnp.maximum(acc[...], 0.0).astype(o_ref.dtype).reshape(Hp, Wp, Cp)


def _prep_params(w1, b1, w2, b2, compute_dtype):
    """Pad Cout to a multiple of 128 (zero pad channels) and reshape HWIO -> (9, C, Cp).

    Row index k = dy*3 + dx matches the tap order inside the kernel."""
    Cin, Cout = w1.shape[2], w1.shape[3]
    Cp = _round_up(Cout, LANE)
    po = Cp - Cout
    w1p = jnp.pad(w1, ((0, 0), (0, 0), (0, 0), (0, po)))
    w2p = jnp.pad(w2, ((0, 0), (0, 0), (0, po), (0, po)))
    b1p = jnp.pad(b1, ((0, po),)).reshape(1, Cp).astype(jnp.float32)
    b2p = jnp.pad(b2, ((0, po),)).reshape(1, Cp).astype(jnp.float32)
    w1m = w1p.reshape(9, Cin, Cp).astype(compute_dtype)
    w2m = w2p.reshape(9, Cp, Cp).astype(compute_dtype)
    return w1m, b1p, w2m, b2p, Cp


def _down_block_x4(x4, w1m, b1p, w2m, b2p, compute_dtype):
    """Core pallas_call.  x4: (N, 4, Hp, Wp, Cin) f32.  Returns (N, Hp, Wp, Cp) f32."""
    N, _, Hp, Wp, Cin = x4.shape
    Cp = w1m.shape[-1]
    itemc = np.dtype(compute_dtype).itemsize

    # VMEM budget: derived from the actual block + scratch footprint, capped at 75% of
    # the generation's physical VMEM (48 MiB on v7x, 96 MiB on v5e/v6e).
    blk_bytes = (4 * (4 * Hp * Wp * Cin)                  # input block (f32)
                 + itemc * (9 * Cin * Cp + 9 * Cp * Cp)   # weights
                 + 4 * 2 * Cp                             # biases (f32)
                 + 4 * (Hp * Wp * Cp))                    # output block (f32)
    scratch_bytes = (itemc * ((Hp + 2) * (Wp + 2 * W_ALIGN) * (Cin + Cp))
                     + 4 * Hp * Wp * Cp)
    try:
        vmem_cap = pltpu.get_tpu_info().vmem_capacity_bytes
    except Exception:
        vmem_cap = 64 * 1024 * 1024
    vmem_limit = min(int(0.75 * vmem_cap),
                     4 * blk_bytes + scratch_bytes + (16 << 20))

    flops = 2 * N * Hp * Wp * 9 * (Cin * Cp + Cp * Cp)
    bytes_accessed = (4 * x4.size
                      + itemc * (w1m.size + w2m.size)
                      + 4 * (b1p.size + b2p.size)
                      + 4 * N * Hp * Wp * Cp)
    cost = pl.CostEstimate(flops=flops, transcendentals=0,
                           bytes_accessed=bytes_accessed)

    return pl.pallas_call(
        down_block_kernel,
        out_shape=jax.ShapeDtypeStruct((N, Hp, Wp, Cp), jnp.float32),
        grid_spec=pltpu.PrefetchScalarGridSpec(
            num_scalar_prefetch=0,
            grid=(N,),   # one image per grid step; see NOTE in header for H-tiling
            in_specs=[
                pl.BlockSpec((1, 4, Hp, Wp, Cin), lambda n: (n, 0, 0, 0, 0)),
                pl.BlockSpec((9, Cin, Cp), lambda n: (0, 0, 0)),
                pl.BlockSpec((1, Cp), lambda n: (0, 0)),
                pl.BlockSpec((9, Cp, Cp), lambda n: (0, 0, 0)),
                pl.BlockSpec((1, Cp), lambda n: (0, 0)),
            ],
            out_specs=pl.BlockSpec((1, Hp, Wp, Cp), lambda n: (n, 0, 0, 0)),
            scratch_shapes=[
                pltpu.VMEM((Hp + 2, Wp + 2 * W_ALIGN, Cin), compute_dtype),
                pltpu.VMEM((Hp + 2, Wp + 2 * W_ALIGN, Cp), compute_dtype),
                pltpu.VMEM((Hp * Wp, Cp), jnp.float32),
            ],
        ),
        compiler_params=pltpu.CompilerParams(
            # Batch images are independent -> shard the grid across TCs on v7x;
            # harmless on single-TC v5e/v6e.
            dimension_semantics=("parallel",),
            vmem_limit_bytes=vmem_limit,
        ),
        cost_estimate=cost,
    )(x4, w1m, b1p, w2m, b2p)


def down_block_nhwc(x_nhwc, w1, b1, w2, b2, compute_dtype=jnp.float32):
    """NHWC-native path (use when chaining blocks to skip the NCHW boundary transposes).

    x: (N, H, W, Cin) -> (N, H//2, W//2, Cout)."""
    N, H, W, Cin = x_nhwc.shape
    Cout = w1.shape[-1]
    Hp, Wp = H // 2, W // 2
    x_nhwc = x_nhwc[:, :2 * Hp, :2 * Wp, :]           # floor-mode pooling
    x4 = (x_nhwc.reshape(N, Hp, 2, Wp, 2, Cin)
                .transpose(0, 2, 4, 1, 3, 5)
                .reshape(N, 4, Hp, Wp, Cin))
    w1m, b1p, w2m, b2p, _ = _prep_params(w1, b1, w2, b2, compute_dtype)
    out = _down_block_x4(x4, w1m, b1p, w2m, b2p, compute_dtype)
    return out[..., :Cout]


def down_block(x_nchw, w1, b1, w2, b2, compute_dtype=jnp.float32):
    """NCHW boundary wrapper matching torch DownBlock.forward.

    x: (N, Cin, H, W); weights in HWIO (3, 3, I, O) (torch Conv2d (O,I,3,3) transposed).
    Returns (N, Cout, H//2, W//2)."""
    N, Cin, H, W = x_nchw.shape
    Cout = w1.shape[-1]
    Hp, Wp = H // 2, W // 2
    x_nchw = x_nchw[:, :, :2 * Hp, :2 * Wp]           # floor-mode pooling
    # Single fused boundary transpose NCHW -> (N, 4, Hp, Wp, Cin): one HBM pass that
    # also exposes the 2x2 pool window on a free leading axis.
    x4 = (x_nchw.reshape(N, Cin, Hp, 2, Wp, 2)
                .transpose(0, 3, 5, 2, 4, 1)
                .reshape(N, 4, Hp, Wp, Cin))
    w1m, b1p, w2m, b2p, _ = _prep_params(w1, b1, w2, b2, compute_dtype)
    out = _down_block_x4(x4, w1m, b1p, w2m, b2p, compute_dtype)
    return jnp.transpose(out[..., :Cout], (0, 3, 1, 2))   # NHWC -> NCHW at the boundary


def reference(x_nchw, w1, b1, w2, b2):
    """Pure-JAX reference matching F.max_pool2d + Conv2d(pad=1) + ReLU semantics."""
    x = jnp.transpose(x_nchw, (0, 2, 3, 1))
    x = jax.lax.reduce_window(x, -jnp.inf, jax.lax.max,
                              (1, 2, 2, 1), (1, 2, 2, 1), 'VALID')
    dn = ('NHWC', 'HWIO', 'NHWC')
    x = jax.nn.relu(jax.lax.conv_general_dilated(
        x, w1, (1, 1), ((1, 1), (1, 1)), dimension_numbers=dn) + b1)
    x = jax.nn.relu(jax.lax.conv_general_dilated(
        x, w2, (1, 1), ((1, 1), (1, 1)), dimension_numbers=dn) + b2)
    return jnp.transpose(x, (0, 3, 1, 2))


if __name__ == "__main__":
    N, Cin, H, W = 2, 4, 16, 16
    Cout = 8

    key = jax.random.PRNGKey(0)
    k1, k2, k3, k4, k5 = jax.random.split(key, 5)
    x = jax.random.normal(k1, (N, Cin, H, W), jnp.float32)
    # Deterministic synthetic parameters (HWIO layout; equivalent parametrization to
    # torch's Conv2d (O, I, kH, kW) weights).
    w1 = jax.random.normal(k2, (3, 3, Cin, Cout), jnp.float32) * 0.2
    b1 = jax.random.normal(k3, (Cout,), jnp.float32) * 0.1
    w2 = jax.random.normal(k4, (3, 3, Cout, Cout), jnp.float32) * 0.2
    b2 = jax.random.normal(k5, (Cout,), jnp.float32) * 0.1

    out = down_block(x, w1, b1, w2, b2)      # f32 path (bf16 is opt-in via compute_dtype)
    jax.block_until_ready(out)

    ref = reference(x, w1, b1, w2, b2)
    assert out.shape == (N, Cout, H // 2, W // 2), out.shape
    assert jnp.allclose(out, ref, atol=1e-4, rtol=1e-4), "mismatch vs JAX reference"
    print("KERNEL_OK")
</pallas_src>

<mosaic_0001>
module attributes {stable_mosaic.version = 11 : i64} {
  func.func @down_block_kernel(%arg0: i32, %arg1: memref<1x4x8x8x4xf32, #tpu.memory_space<vmem>>, %arg2: memref<9x4x128xf32, #tpu.memory_space<vmem>>, %arg3: memref<1x128xf32, #tpu.memory_space<vmem>>, %arg4: memref<9x128x128xf32, #tpu.memory_space<vmem>>, %arg5: memref<1x128xf32, #tpu.memory_space<vmem>>, %arg6: memref<1x8x8x128xf32, #tpu.memory_space<vmem>>, %arg7: memref<10x24x4xf32, #tpu.memory_space<vmem>>, %arg8: memref<10x24x128xf32, #tpu.memory_space<vmem>>, %arg9: memref<64x128xf32, #tpu.memory_space<vmem>>) attributes {dimension_semantics = [#tpu.dimension_semantics<parallel>], iteration_bounds = array<i64: 2>, scalar_prefetch = 0 : i64, scratch_operands = 3 : i64, tpu.core_type = #tpu.core_type<tc>, window_params = [{transform_indices = @transform_0, window_bounds = array<i64: 1, 4, 8, 8, 4>}, {pipeline_mode = #tpu.pipeline_mode<synchronous>, transform_indices = @transform_1, window_bounds = array<i64: 9, 4, 128>}, {pipeline_mode = #tpu.pipeline_mode<synchronous>, transform_indices = @transform_2, window_bounds = array<i64: 1, 128>}, {pipeline_mode = #tpu.pipeline_mode<synchronous>, transform_indices = @transform_3, window_bounds = array<i64: 9, 128, 128>}, {pipeline_mode = #tpu.pipeline_mode<synchronous>, transform_indices = @transform_4, window_bounds = array<i64: 1, 128>}, {transform_indices = @transform_5, window_bounds = array<i64: 1, 8, 8, 128>}]} {
    %c0 = arith.constant 0 : index
    %c0_0 = arith.constant 0 : index
    %c0_1 = arith.constant 0 : index
    %c0_2 = arith.constant 0 : index
    %c0_3 = arith.constant 0 : index
    %0 = vector.load %arg1[%c0, %c0_0, %c0_1, %c0_2, %c0_3] : memref<1x4x8x8x4xf32, #tpu.memory_space<vmem>>, vector<1x1x8x8x4xf32>
    %1 = vector.shape_cast %0 : vector<1x1x8x8x4xf32> to vector<8x8x4xf32>
    %c0_4 = arith.constant 0 : index
    %c1 = arith.constant 1 : index
    %c0_5 = arith.constant 0 : index
    %c0_6 = arith.constant 0 : index
    %c0_7 = arith.constant 0 : index
    %2 = vector.load %arg1[%c0_4, %c1, %c0_5, %c0_6, %c0_7] : memref<1x4x8x8x4xf32, #tpu.memory_space<vmem>>, vector<1x1x8x8x4xf32>
    %3 = vector.shape_cast %2 : vector<1x1x8x8x4xf32> to vector<8x8x4xf32>
    %4 = arith.maximumf %1, %3 : vector<8x8x4xf32>
    %c0_8 = arith.constant 0 : index
    %c2 = arith.constant 2 : index
    %c0_9 = arith.constant 0 : index
    %c0_10 = arith.constant 0 : index
    %c0_11 = arith.constant 0 : index
    %5 = vector.load %arg1[%c0_8, %c2, %c0_9, %c0_10, %c0_11] : memref<1x4x8x8x4xf32, #tpu.memory_space<vmem>>, vector<1x1x8x8x4xf32>
    %6 = vector.shape_cast %5 : vector<1x1x8x8x4xf32> to vector<8x8x4xf32>
    %c0_12 = arith.constant 0 : index
    %c3 = arith.constant 3 : index
    %c0_13 = arith.constant 0 : index
    %c0_14 = arith.constant 0 : index
    %c0_15 = arith.constant 0 : index
    %7 = vector.load %arg1[%c0_12, %c3, %c0_13, %c0_14, %c0_15] : memref<1x4x8x8x4xf32, #tpu.memory_space<vmem>>, vector<1x1x8x8x4xf32>
    %8 = vector.shape_cast %7 : vector<1x1x8x8x4xf32> to vector<8x8x4xf32>
    %9 = arith.maximumf %6, %8 : vector<8x8x4xf32>
    %10 = arith.maximumf %4, %9 : vector<8x8x4xf32>
    %cst = arith.constant 0.000000e+00 : f32
    %11 = vector.broadcast %cst : f32 to vector<1x24x4xf32>
    %c0_16 = arith.constant 0 : index
    %c0_17 = arith.constant 0 : index
    %c0_18 = arith.constant 0 : index
    %12 = vector.load %arg7[%c0_16, %c0_17, %c0_18] : memref<10x24x4xf32, #tpu.memory_space<vmem>>, vector<1x24x4xf32>
    tpu.vector_store %arg7[%c0_16, %c0_17, %c0_18], %11 {strides = array<i32>} : memref<10x24x4xf32, #tpu.memory_space<vmem>>, vector<1x24x4xf32>,
    %c9 = arith.constant 9 : index
    %c0_19 = arith.constant 0 : index
    %c0_20 = arith.constant 0 : index
    %13 = vector.load %arg7[%c9, %c0_19, %c0_20] : memref<10x24x4xf32, #tpu.memory_space<vmem>>, vector<1x24x4xf32>
    tpu.vector_store %arg7[%c9, %c0_19, %c0_20], %11 {strides = array<i32>} : memref<10x24x4xf32, #tpu.memory_space<vmem>>, vector<1x24x4xf32>,
    %cst_21 = arith.constant 0.000000e+00 : f32
    %14 = vector.broadcast %cst_21 : f32 to vector<10x8x4xf32>
    %c0_22 = arith.constant 0 : index
    %c0_23 = arith.constant 0 : index
    %c0_24 = arith.constant 0 : index
    %15 = vector.load %arg7[%c0_22, %c0_23, %c0_24] : memref<10x24x4xf32, #tpu.memory_space<vmem>>, vector<10x8x4xf32>
    tpu.vector_store %arg7[%c0_22, %c0_23, %c0_24], %14 {strides = array<i32>} : memref<10x24x4xf32, #tpu.memory_space<vmem>>, vector<10x8x4xf32>,
    %c0_25 = arith.constant 0 : index
    %c16 = arith.constant 16 : index
    %c0_26 = arith.constant 0 : index
    %16 = vector.load %arg7[%c0_25, %c16, %c0_26] : memref<10x24x4xf32, #tpu.memory_space<vmem>>, vector<10x8x4xf32>
    tpu.vector_store %arg7[%c0_25, %c16, %c0_26], %14 {strides = array<i32>} : memref<10x24x4xf32, #tpu.memory_space<vmem>>, vector<10x8x4xf32>,
    %c1_27 = arith.constant 1 : index
    %c8 = arith.constant 8 : index
    %c0_28 = arith.constant 0 : index
    %17 = vector.load %arg7[%c1_27, %c8, %c0_28] : memref<10x24x4xf32, #tpu.memory_space<vmem>>, vector<8x8x4xf32>
    tpu.vector_store %arg7[%c1_27, %c8, %c0_28], %10 {strides = array<i32>} : memref<10x24x4xf32, #tpu.memory_space<vmem>>, vector<8x8x4xf32>,
    %c0_29 = arith.constant 0 : index
    %c7 = arith.constant 7 : index
    %c0_30 = arith.constant 0 : index
    %18 = vector.load %arg7[%c0_29, %c7, %c0_30] : memref<10x24x4xf32, #tpu.memory_space<vmem>>, vector<8x8x4xf32>
    %19 = vector.shape_cast %18 : vector<8x8x4xf32> to vector<64x4xf32>
    %c0_31 = arith.constant 0 : index
    %c0_32 = arith.constant 0 : index
    %c0_33 = arith.constant 0 : index
    %20 = vector.load %arg2[%c0_31, %c0_32, %c0_33] : memref<9x4x128xf32, #tpu.memory_space<vmem>>, vector<1x4x128xf32>
    %21 = vector.shape_cast %20 : vector<1x4x128xf32> to vector<4x128xf32>
    %cst_34 = arith.constant dense<0.000000e+00> : vector<64x128xf32>
    %22 = tpu.matmul %19, %21, %cst_34 {dimension_numbers = #tpu.dot_dimension_numbers<[1], [0], [0], [1], [0, 0, 1, 1], [], []>} : vector<64x4xf32>, vector<4x128xf32>, vector<64x128xf32> -> vector<64x128xf32>
    %c0_35 = arith.constant 0 : index
    %c0_36 = arith.constant 0 : index
    %23 = vector.load %arg3[%c0_35, %c0_36] : memref<1x128xf32, #tpu.memory_space<vmem>>, vector<1x128xf32>
    %24 = vector.broadcast %23 : vector<1x128xf32> to vector<64x128xf32>
    %25 = arith.addf %22, %24 : vector<64x128xf32>
    %c0_37 = arith.constant 0 : index
    %c0_38 = arith.constant 0 : index
    %26 = vector.load %arg9[%c0_37, %c0_38] : memref<64x128xf32, #tpu.memory_space<vmem>>, vector<64x128xf32>
    tpu.vector_store %arg9[%c0_37, %c0_38], %25 {strides = array<i32>} : memref<64x128xf32, #tpu.memory_space<vmem>>, vector<64x128xf32>,
    %c0_39 = arith.constant 0 : index
    %c8_40 = arith.constant 8 : index
    %c0_41 = arith.constant 0 : index
    %27 = vector.load %arg7[%c0_39, %c8_40, %c0_41] : memref<10x24x4xf32, #tpu.memory_space<vmem>>, vector<8x8x4xf32>
    %28 = vector.shape_cast %27 : vector<8x8x4xf32> to vector<64x4xf32>
    %c1_42 = arith.constant 1 : index
    %c0_43 = arith.constant 0 : index
    %c0_44 = arith.constant 0 : index
    %29 = vector.load %arg2[%c1_42, %c0_43, %c0_44] : memref<9x4x128xf32, #tpu.memory_space<vmem>>, vector<1x4x128xf32>
    %30 = vector.shape_cast %29 : vector<1x4x128xf32> to vector<4x128xf32>
    %cst_45 = arith.constant dense<0.000000e+00> : vector<64x128xf32>
    %31 = tpu.matmul %28, %30, %cst_45 {dimension_numbers = #tpu.dot_dimension_numbers<[1], [0], [0], [1], [0, 0, 1, 1], [], []>} : vector<64x4xf32>, vector<4x128xf32>, vector<64x128xf32> -> vector<64x128xf32>
    %c0_46 = arith.constant 0 : index
    %c0_47 = arith.constant 0 : index
    %32 = vector.load %arg9[%c0_46, %c0_47] : memref<64x128xf32, #tpu.memory_space<vmem>>, vector<64x128xf32>
    %33 = arith.addf %32, %31 : vector<64x128xf32>
    %c0_48 = arith.constant 0 : index
    %c0_49 = arith.constant 0 : index
    %34 = vector.load %arg9[%c0_48, %c0_49] : memref<64x128xf32, #tpu.memory_space<vmem>>, vector<64x128xf32>
    tpu.vector_store %arg9[%c0_48, %c0_49], %33 {strides = array<i32>} : memref<64x128xf32, #tpu.memory_space<vmem>>, vector<64x128xf32>,
    %c0_50 = arith.constant 0 : index
    %c9_51 = arith.constant 9 : index
    %c0_52 = arith.constant 0 : index
    %35 = vector.load %arg7[%c0_50, %c9_51, %c0_52] : memref<10x24x4xf32, #tpu.memory_space<vmem>>, vector<8x8x4xf32>
    %36 = vector.shape_cast %35 : vector<8x8x4xf32> to vector<64x4xf32>
    %c2_53 = arith.constant 2 : index
    %c0_54 = arith.constant 0 : index
    %c0_55 = arith.constant 0 : index
    %37 = vector.load %arg2[%c2_53, %c0_54, %c0_55] : memref<9x4x128xf32, #tpu.memory_space<vmem>>, vector<1x4x128xf32>
    %38 = vector.shape_cast %37 : vector<1x4x128xf32> to vector<4x128xf32>
    %cst_56 = arith.constant dense<0.000000e+00> : vector<64x128xf32>
    %39 = tpu.matmul %36, %38, %cst_56 {dimension_numbers = #tpu.dot_dimension_numbers<[1], [0], [0], [1], [0, 0, 1, 1], [], []>} : vector<64x4xf32>, vector<4x128xf32>, vector<64x128xf32> -> vector<64x128xf32>
    %c0_57 = arith.constant 0 : index
    %c0_58 = arith.constant 0 : index
    %40 = vector.load %arg9[%c0_57, %c0_58] : memref<64x128xf32, #tpu.memory_space<vmem>>, vector<64x128xf32>
    %41 = arith.addf %40, %39 : vector<64x128xf32>
    %c0_59 = arith.constant 0 : index
    %c0_60 = arith.constant 0 : index
    %42 = vector.load %arg9[%c0_59, %c0_60] : memref<64x128xf32, #tpu.memory_space<vmem>>, vector<64x128xf32>
    tpu.vector_store %arg9[%c0_59, %c0_60], %41 {strides = array<i32>} : memref<64x128xf32, #tpu.memory_space<vmem>>, vector<64x128xf32>,
    %c1_61 = arith.constant 1 : index
    %c7_62 = arith.constant 7 : index
    %c0_63 = arith.constant 0 : index
    %43 = vector.load %arg7[%c1_61, %c7_62, %c0_63] : memref<10x24x4xf32, #tpu.memory_space<vmem>>, vector<8x8x4xf32>
    %44 = vector.shape_cast %43 : vector<8x8x4xf32> to vector<64x4xf32>
    %c3_64 = arith.constant 3 : index
    %c0_65 = arith.constant 0 : index
    %c0_66 = arith.constant 0 : index
    %45 = vector.load %arg2[%c3_64, %c0_65, %c0_66] : memref<9x4x128xf32, #tpu.memory_space<vmem>>, vector<1x4x128xf32>
    %46 = vector.shape_cast %45 : vector<1x4x128xf32> to vector<4x128xf32>
    %cst_67 = arith.constant dense<0.000000e+00> : vector<64x128xf32>
    %47 = tpu.matmul %44, %46, %cst_67 {dimension_numbers = #tpu.dot_dimension_numbers<[1], [0], [0], [1], [0, 0, 1, 1], [], []>} : vector<64x4xf32>, vector<4x128xf32>, vector<64x128xf32> -> vector<64x128xf32>
    %c0_68 = arith.constant 0 : index
    %c0_69 = arith.constant 0 : index
    %48 = vector.load %arg9[%c0_68, %c0_69] : memref<64x128xf32, #tpu.memory_space<vmem>>, vector<64x128xf32>
    %49 = arith.addf %48, %47 : vector<64x128xf32>
    %c0_70 = arith.constant 0 : index
    %c0_71 = arith.constant 0 : index
    %50 = vector.load %arg9[%c0_70, %c0_71] : memref<64x128xf32, #tpu.memory_space<vmem>>, vector<64x128xf32>
    tpu.vector_store %arg9[%c0_70, %c0_71], %49 {strides = array<i32>} : memref<64x128xf32, #tpu.memory_space<vmem>>, vector<64x128xf32>,
    %c1_72 = arith.constant 1 : index
    %c8_73 = arith.constant 8 : index
    %c0_74 = arith.constant 0 : index
    %51 = vector.load %arg7[%c1_72, %c8_73, %c0_74] : memref<10x24x4xf32, #tpu.memory_space<vmem>>, vector<8x8x4xf32>
    %52 = vector.shape_cast %51 : vector<8x8x4xf32> to vector<64x4xf32>
    %c4 = arith.constant 4 : index
    %c0_75 = arith.constant 0 : index
    %c0_76 = arith.constant 0 : index
    %53 = vector.load %arg2[%c4, %c0_75, %c0_76] : memref<9x4x128xf32, #tpu.memory_space<vmem>>, vector<1x4x128xf32>
    %54 = vector.shape_cast %53 : vector<1x4x128xf32> to vector<4x128xf32>
    %cst_77 = arith.constant dense<0.000000e+00> : vector<64x128xf32>
    %55 = tpu.matmul %52, %54, %cst_77 {dimension_numbers = #tpu.dot_dimension_numbers<[1], [0], [0], [1], [0, 0, 1, 1], [], []>} : vector<64x4xf32>, vector<4x128xf32>, vector<64x128xf32> -> vector<64x128xf32>
    %c0_78 = arith.constant 0 : index
    %c0_79 = arith.constant 0 : index
    %56 = vector.load %arg9[%c0_78, %c0_79] : memref<64x128xf32, #tpu.memory_space<vmem>>, vector<64x128xf32>
    %57 = arith.addf %56, %55 : vector<64x128xf32>
    %c0_80 = arith.constant 0 : index
    %c0_81 = arith.constant 0 : index
    %58 = vector.load %arg9[%c0_80, %c0_81] : memref<64x128xf32, #tpu.memory_space<vmem>>, vector<64x128xf32>
    tpu.vector_store %arg9[%c0_80, %c0_81], %57 {strides = array<i32>} : memref<64x128xf32, #tpu.memory_space<vmem>>, vector<64x128xf32>,
    %c1_82 = arith.constant 1 : index
    %c9_83 = arith.constant 9 : index
    %c0_84 = arith.constant 0 : index
    %59 = vector.load %arg7[%c1_82, %c9_83, %c0_84] : memref<10x24x4xf32, #tpu.memory_space<vmem>>, vector<8x8x4xf32>
    %60 = vector.shape_cast %59 : vector<8x8x4xf32> to vector<64x4xf32>
    %c5 = arith.constant 5 : index
    %c0_85 = arith.constant 0 : index
    %c0_86 = arith.constant 0 : index
    %61 = vector.load %arg2[%c5, %c0_85, %c0_86] : memref<9x4x128xf32, #tpu.memory_space<vmem>>, vector<1x4x128xf32>
    %62 = vector.shape_cast %61 : vector<1x4x128xf32> to vector<4x128xf32>
    %cst_87 = arith.constant dense<0.000000e+00> : vector<64x128xf32>
    %63 = tpu.matmul %60, %62, %cst_87 {dimension_numbers = #tpu.dot_dimension_numbers<[1], [0], [0], [1], [0, 0, 1, 1], [], []>} : vector<64x4xf32>, vector<4x128xf32>, vector<64x128xf32> -> vector<64x128xf32>
    %c0_88 = arith.constant 0 : index
    %c0_89 = arith.constant 0 : index
    %64 = vector.load %arg9[%c0_88, %c0_89] : memref<64x128xf32, #tpu.memory_space<vmem>>, vector<64x128xf32>
    %65 = arith.addf %64, %63 : vector<64x128xf32>
    %c0_90 = arith.constant 0 : index
    %c0_91 = arith.constant 0 : index
    %66 = vector.load %arg9[%c0_90, %c0_91] : memref<64x128xf32, #tpu.memory_space<vmem>>, vector<64x128xf32>
    tpu.vector_store %arg9[%c0_90, %c0_91], %65 {strides = array<i32>} : memref<64x128xf32, #tpu.memory_space<vmem>>, vector<64x128xf32>,
    %c2_92 = arith.constant 2 : index
    %c7_93 = arith.constant 7 : index
    %c0_94 = arith.constant 0 : index
    %67 = vector.load %arg7[%c2_92, %c7_93, %c0_94] : memref<10x24x4xf32, #tpu.memory_space<vmem>>, vector<8x8x4xf32>
    %68 = vector.shape_cast %67 : vector<8x8x4xf32> to vector<64x4xf32>
    %c6 = arith.constant 6 : index
    %c0_95 = arith.constant 0 : index
    %c0_96 = arith.constant 0 : index
    %69 = vector.load %arg2[%c6, %c0_95, %c0_96] : memref<9x4x128xf32, #tpu.memory_space<vmem>>, vector<1x4x128xf32>
    %70 = vector.shape_cast %69 : vector<1x4x128xf32> to vector<4x128xf32>
    %cst_97 = arith.constant dense<0.000000e+00> : vector<64x128xf32>
    %71 = tpu.matmul %68, %70, %cst_97 {dimension_numbers = #tpu.dot_dimension_numbers<[1], [0], [0], [1], [0, 0, 1, 1], [], []>} : vector<64x4xf32>, vector<4x128xf32>, vector<64x128xf32> -> vector<64x128xf32>
    %c0_98 = arith.constant 0 : index
    %c0_99 = arith.constant 0 : index
    %72 = vector.load %arg9[%c0_98, %c0_99] : memref<64x128xf32, #tpu.memory_space<vmem>>, vector<64x128xf32>
    %73 = arith.addf %72, %71 : vector<64x128xf32>
    %c0_100 = arith.constant 0 : index
    %c0_101 = arith.constant 0 : index
    %74 = vector.load %arg9[%c0_100, %c0_101] : memref<64x128xf32, #tpu.memory_space<vmem>>, vector<64x128xf32>
    tpu.vector_store %arg9[%c0_100, %c0_101], %73 {strides = array<i32>} : memref<64x128xf32, #tpu.memory_space<vmem>>, vector<64x128xf32>,
    %c2_102 = arith.constant 2 : index
    %c8_103 = arith.constant 8 : index
    %c0_104 = arith.constant 0 : index
    %75 = vector.load %arg7[%c2_102, %c8_103, %c0_104] : memref<10x24x4xf32, #tpu.memory_space<vmem>>, vector<8x8x4xf32>
    %76 = vector.shape_cast %75 : vector<8x8x4xf32> to vector<64x4xf32>
    %c7_105 = arith.constant 7 : index
    %c0_106 = arith.constant 0 : index
    %c0_107 = arith.constant 0 : index
    %77 = vector.load %arg2[%c7_105, %c0_106, %c0_107] : memref<9x4x128xf32, #tpu.memory_space<vmem>>, vector<1x4x128xf32>
    %78 = vector.shape_cast %77 : vector<1x4x128xf32> to vector<4x128xf32>
    %cst_108 = arith.constant dense<0.000000e+00> : vector<64x128xf32>
    %79 = tpu.matmul %76, %78, %cst_108 {dimension_numbers = #tpu.dot_dimension_numbers<[1], [0], [0], [1], [0, 0, 1, 1], [], []>} : vector<64x4xf32>, vector<4x128xf32>, vector<64x128xf32> -> vector<64x128xf32>
    %c0_109 = arith.constant 0 : index
    %c0_110 = arith.constant 0 : index
    %80 = vector.load %arg9[%c0_109, %c0_110] : memref<64x128xf32, #tpu.memory_space<vmem>>, vector<64x128xf32>
    %81 = arith.addf %80, %79 : vector<64x128xf32>
    %c0_111 = arith.constant 0 : index
    %c0_112 = arith.constant 0 : index
    %82 = vector.load %arg9[%c0_111, %c0_112] : memref<64x128xf32, #tpu.memory_space<vmem>>, vector<64x128xf32>
    tpu.vector_store %arg9[%c0_111, %c0_112], %81 {strides = array<i32>} : memref<64x128xf32, #tpu.memory_space<vmem>>, vector<64x128xf32>,
    %c2_113 = arith.constant 2 : index
    %c9_114 = arith.constant 9 : index
    %c0_115 = arith.constant 0 : index
    %83 = vector.load %arg7[%c2_113, %c9_114, %c0_115] : memref<10x24x4xf32, #tpu.memory_space<vmem>>, vector<8x8x4xf32>
    %84 = vector.shape_cast %83 : vector<8x8x4xf32> to vector<64x4xf32>
    %c8_116 = arith.constant 8 : index
    %c0_117 = arith.constant 0 : index
    %c0_118 = arith.constant 0 : index
    %85 = vector.load %arg2[%c8_116, %c0_117, %c0_118] : memref<9x4x128xf32, #tpu.memory_space<vmem>>, vector<1x4x128xf32>
    %86 = vector.shape_cast %85 : vector<1x4x128xf32> to vector<4x128xf32>
    %cst_119 = arith.constant dense<0.000000e+00> : vector<64x128xf32>
    %87 = tpu.matmul %84, %86, %cst_119 {dimension_numbers = #tpu.dot_dimension_numbers<[1], [0], [0], [1], [0, 0, 1, 1], [], []>} : vector<64x4xf32>, vector<4x128xf32>, vector<64x128xf32> -> vector<64x128xf32>
    %c0_120 = arith.constant 0 : index
    %c0_121 = arith.constant 0 : index
    %88 = vector.load %arg9[%c0_120, %c0_121] : memref<64x128xf32, #tpu.memory_space<vmem>>, vector<64x128xf32>
    %89 = arith.addf %88, %87 : vector<64x128xf32>
    %c0_122 = arith.constant 0 : index
    %c0_123 = arith.constant 0 : index
    %90 = vector.load %arg9[%c0_122, %c0_123] : memref<64x128xf32, #tpu.memory_space<vmem>>, vector<64x128xf32>
    tpu.vector_store %arg9[%c0_122, %c0_123], %89 {strides = array<i32>} : memref<64x128xf32, #tpu.memory_space<vmem>>, vector<64x128xf32>,
    %cst_124 = arith.constant 0.000000e+00 : f32
    %91 = vector.broadcast %cst_124 : f32 to vector<1x24x128xf32>
    %c0_125 = arith.constant 0 : index
    %c0_126 = arith.constant 0 : index
    %c0_127 = arith.constant 0 : index
    %92 = vector.load %arg8[%c0_125, %c0_126, %c0_127] : memref<10x24x128xf32, #tpu.memory_space<vmem>>, vector<1x24x128xf32>
    tpu.vector_store %arg8[%c0_125, %c0_126, %c0_127], %91 {strides = array<i32>} : memref<10x24x128xf32, #tpu.memory_space<vmem>>, vector<1x24x128xf32>,
    %c9_128 = arith.constant 9 : index
    %c0_129 = arith.constant 0 : index
    %c0_130 = arith.constant 0 : index
    %93 = vector.load %arg8[%c9_128, %c0_129, %c0_130] : memref<10x24x128xf32, #tpu.memory_space<vmem>>, vector<1x24x128xf32>
    tpu.vector_store %arg8[%c9_128, %c0_129, %c0_130], %91 {strides = array<i32>} : memref<10x24x128xf32, #tpu.memory_space<vmem>>, vector<1x24x128xf32>,
    %cst_131 = arith.constant 0.000000e+00 : f32
    %94 = vector.broadcast %cst_131 : f32 to vector<10x8x128xf32>
    %c0_132 = arith.constant 0 : index
    %c0_133 = arith.constant 0 : index
    %c0_134 = arith.constant 0 : index
    %95 = vector.load %arg8[%c0_132, %c0_133, %c0_134] : memref<10x24x128xf32, #tpu.memory_space<vmem>>, vector<10x8x128xf32>
    tpu.vector_store %arg8[%c0_132, %c0_133, %c0_134], %94 {strides = array<i32>} : memref<10x24x128xf32, #tpu.memory_space<vmem>>, vector<10x8x128xf32>,
    %c0_135 = arith.constant 0 : index
    %c16_136 = arith.constant 16 : index
    %c0_137 = arith.constant 0 : index
    %96 = vector.load %arg8[%c0_135, %c16_136, %c0_137] : memref<10x24x128xf32, #tpu.memory_space<vmem>>, vector<10x8x128xf32>
    tpu.vector_store %arg8[%c0_135, %c16_136, %c0_137], %94 {strides = array<i32>} : memref<10x24x128xf32, #tpu.memory_space<vmem>>, vector<10x8x128xf32>,
    %c0_138 = arith.constant 0 : index
    %c0_139 = arith.constant 0 : index
    %97 = vector.load %arg9[%c0_138, %c0_139] : memref<64x128xf32, #tpu.memory_space<vmem>>, vector<64x128xf32>
    %cst_140 = arith.constant 0.000000e+00 : f32
    %98 = vector.broadcast %cst_140 : f32 to vector<64x128xf32>
    %99 = arith.maximumf %97, %98 : vector<64x128xf32>
    %100 = vector.shape_cast %99 : vector<64x128xf32> to vector<8x8x128xf32>
    %c1_141 = arith.constant 1 : index
    %c8_142 = arith.constant 8 : index
    %c0_143 = arith.constant 0 : index
    %101 = vector.load %arg8[%c1_141, %c8_142, %c0_143] : memref<10x24x128xf32, #tpu.memory_space<vmem>>, vector<8x8x128xf32>
    tpu.vector_store %arg8[%c1_141, %c8_142, %c0_143], %100 {strides = array<i32>} : memref<10x24x128xf32, #tpu.memory_space<vmem>>, vector<8x8x128xf32>,
    %c0_144 = arith.constant 0 : index
    %c7_145 = arith.constant 7 : index
    %c0_146 = arith.constant 0 : index
    %102 = vector.load %arg8[%c0_144, %c7_145, %c0_146] : memref<10x24x128xf32, #tpu.memory_space<vmem>>, vector<8x8x128xf32>
    %103 = vector.shape_cast %102 : vector<8x8x128xf32> to vector<64x128xf32>
    %c0_147 = arith.constant 0 : index
    %c0_148 = arith.constant 0 : index
    %c0_149 = arith.constant 0 : index
    %104 = vector.load %arg4[%c0_147, %c0_148, %c0_149] : memref<9x128x128xf32, #tpu.memory_space<vmem>>, vector<1x128x128xf32>
    %105 = vector.shape_cast %104 : vector<1x128x128xf32> to vector<128x128xf32>
    %cst_150 = arith.constant dense<0.000000e+00> : vector<64x128xf32>
    %106 = tpu.matmul %103, %105, %cst_150 {dimension_numbers = #tpu.dot_dimension_numbers<[1], [0], [0], [1], [0, 0, 1, 1], [], []>} : vector<64x128xf32>, vector<128x128xf32>, vector<64x128xf32> -> vector<64x128xf32>
    %c0_151 = arith.constant 0 : index
    %c0_152 = arith.constant 0 : index
    %107 = vector.load %arg5[%c0_151, %c0_152] : memref<1x128xf32, #tpu.memory_space<vmem>>, vector<1x128xf32>
    %108 = vector.broadcast %107 : vector<1x128xf32> to vector<64x128xf32>
    %109 = arith.addf %106, %108 : vector<64x128xf32>
    %c0_153 = arith.constant 0 : index
    %c0_154 = arith.constant 0 : index
    %110 = vector.load %arg9[%c0_153, %c0_154] : memref<64x128xf32, #tpu.memory_space<vmem>>, vector<64x128xf32>
    tpu.vector_store %arg9[%c0_153, %c0_154], %109 {strides = array<i32>} : memref<64x128xf32, #tpu.memory_space<vmem>>, vector<64x128xf32>,
    %c0_155 = arith.constant 0 : index
    %c8_156 = arith.constant 8 : index
    %c0_157 = arith.constant 0 : index
    %111 = vector.load %arg8[%c0_155, %c8_156, %c0_157] : memref<10x24x128xf32, #tpu.memory_space<vmem>>, vector<8x8x128xf32>
    %112 = vector.shape_cast %111 : vector<8x8x128xf32> to vector<64x128xf32>
    %c1_158 = arith.constant 1 : index
    %c0_159 = arith.constant 0 : index
    %c0_160 = arith.constant 0 : index
    %113 = vector.load %arg4[%c1_158, %c0_159, %c0_160] : memref<9x128x128xf32, #tpu.memory_space<vmem>>, vector<1x128x128xf32>
    %114 = vector.shape_cast %113 : vector<1x128x128xf32> to vector<128x128xf32>
    %cst_161 = arith.constant dense<0.000000e+00> : vector<64x128xf32>
    %115 = tpu.matmul %112, %114, %cst_161 {dimension_numbers = #tpu.dot_dimension_numbers<[1], [0], [0], [1], [0, 0, 1, 1], [], []>} : vector<64x128xf32>, vector<128x128xf32>, vector<64x128xf32> -> vector<64x128xf32>
    %c0_162 = arith.constant 0 : index
    %c0_163 = arith.constant 0 : index
    %116 = vector.load %arg9[%c0_162, %c0_163] : memref<64x128xf32, #tpu.memory_space<vmem>>, vector<64x128xf32>
    %117 = arith.addf %116, %115 : vector<64x128xf32>
    %c0_164 = arith.constant 0 : index
    %c0_165 = arith.constant 0 : index
    %118 = vector.load %arg9[%c0_164, %c0_165] : memref<64x128xf32, #tpu.memory_space<vmem>>, vector<64x128xf32>
    tpu.vector_store %arg9[%c0_164, %c0_165], %117 {strides = array<i32>} : memref<64x128xf32, #tpu.memory_space<vmem>>, vector<64x128xf32>,
    %c0_166 = arith.constant 0 : index
    %c9_167 = arith.constant 9 : index
    %c0_168 = arith.constant 0 : index
    %119 = vector.load %arg8[%c0_166, %c9_167, %c0_168] : memref<10x24x128xf32, #tpu.memory_space<vmem>>, vector<8x8x128xf32>
    %120 = vector.shape_cast %119 : vector<8x8x128xf32> to vector<64x128xf32>
    %c2_169 = arith.constant 2 : index
    %c0_170 = arith.constant 0 : index
    %c0_171 = arith.constant 0 : index
    %121 = vector.load %arg4[%c2_169, %c0_170, %c0_171] : memref<9x128x128xf32, #tpu.memory_space<vmem>>, vector<1x128x128xf32>
    %122 = vector.shape_cast %121 : vector<1x128x128xf32> to vector<128x128xf32>
    %cst_172 = arith.constant dense<0.000000e+00> : vector<64x128xf32>
    %123 = tpu.matmul %120, %122, %cst_172 {dimension_numbers = #tpu.dot_dimension_numbers<[1], [0], [0], [1], [0, 0, 1, 1], [], []>} : vector<64x128xf32>, vector<128x128xf32>, vector<64x128xf32> -> vector<64x128xf32>
    %c0_173 = arith.constant 0 : index
    %c0_174 = arith.constant 0 : index
    %124 = vector.load %arg9[%c0_173, %c0_174] : memref<64x128xf32, #tpu.memory_space<vmem>>, vector<64x128xf32>
    %125 = arith.addf %124, %123 : vector<64x128xf32>
    %c0_175 = arith.constant 0 : index
    %c0_176 = arith.constant 0 : index
    %126 = vector.load %arg9[%c0_175, %c0_176] : memref<64x128xf32, #tpu.memory_space<vmem>>, vector<64x128xf32>
    tpu.vector_store %arg9[%c0_175, %c0_176], %125 {strides = array<i32>} : memref<64x128xf32, #tpu.memory_space<vmem>>, vector<64x128xf32>,
    %c1_177 = arith.constant 1 : index
    %c7_178 = arith.constant 7 : index
    %c0_179 = arith.constant 0 : index
    %127 = vector.load %arg8[%c1_177, %c7_178, %c0_179] : memref<10x24x128xf32, #tpu.memory_space<vmem>>, vector<8x8x128xf32>
    %128 = vector.shape_cast %127 : vector<8x8x128xf32> to vector<64x128xf32>
    %c3_180 = arith.constant 3 : index
    %c0_181 = arith.constant 0 : index
    %c0_182 = arith.constant 0 : index
    %129 = vector.load %arg4[%c3_180, %c0_181, %c0_182] : memref<9x128x128xf32, #tpu.memory_space<vmem>>, vector<1x128x128xf32>
    %130 = vector.shape_cast %129 : vector<1x128x128xf32> to vector<128x128xf32>
    %cst_183 = arith.constant dense<0.000000e+00> : vector<64x128xf32>
    %131 = tpu.matmul %128, %130, %cst_183 {dimension_numbers = #tpu.dot_dimension_numbers<[1], [0], [0], [1], [0, 0, 1, 1], [], []>} : vector<64x128xf32>, vector<128x128xf32>, vector<64x128xf32> -> vector<64x128xf32>
    %c0_184 = arith.constant 0 : index
    %c0_185 = arith.constant 0 : index
    %132 = vector.load %arg9[%c0_184, %c0_185] : memref<64x128xf32, #tpu.memory_space<vmem>>, vector<64x128xf32>
    %133 = arith.addf %132, %131 : vector<64x128xf32>
    %c0_186 = arith.constant 0 : index
    %c0_187 = arith.constant 0 : index
    %134 = vector.load %arg9[%c0_186, %c0_187] : memref<64x128xf32, #tpu.memory_space<vmem>>, vector<64x128xf32>
    tpu.vector_store %arg9[%c0_186, %c0_187], %133 {strides = array<i32>} : memref<64x128xf32, #tpu.memory_space<vmem>>, vector<64x128xf32>,
    %c1_188 = arith.constant 1 : index
    %c8_189 = arith.constant 8 : index
    %c0_190 = arith.constant 0 : index
    %135 = vector.load %arg8[%c1_188, %c8_189, %c0_190] : memref<10x24x128xf32, #tpu.memory_space<vmem>>, vector<8x8x128xf32>
    %136 = vector.shape_cast %135 : vector<8x8x128xf32> to vector<64x128xf32>
    %c4_191 = arith.constant 4 : index
    %c0_192 = arith.constant 0 : index
    %c0_193 = arith.constant 0 : index
    %137 = vector.load %arg4[%c4_191, %c0_192, %c0_193] : memref<9x128x128xf32, #tpu.memory_space<vmem>>, vector<1x128x128xf32>
    %138 = vector.shape_cast %137 : vector<1x128x128xf32> to vector<128x128xf32>
    %cst_194 = arith.constant dense<0.000000e+00> : vector<64x128xf32>
    %139 = tpu.matmul %136, %138, %cst_194 {dimension_numbers = #tpu.dot_dimension_numbers<[1], [0], [0], [1], [0, 0, 1, 1], [], []>} : vector<64x128xf32>, vector<128x128xf32>, vector<64x128xf32> -> vector<64x128xf32>
    %c0_195 = arith.constant 0 : index
    %c0_196 = arith.constant 0 : index
    %140 = vector.load %arg9[%c0_195, %c0_196] : memref<64x128xf32, #tpu.memory_space<vmem>>, vector<64x128xf32>
    %141 = arith.addf %140, %139 : vector<64x128xf32>
    %c0_197 = arith.constant 0 : index
    %c0_198 = arith.constant 0 : index
    %142 = vector.load %arg9[%c0_197, %c0_198] : memref<64x128xf32, #tpu.memory_space<vmem>>, vector<64x128xf32>
    tpu.vector_store %arg9[%c0_197, %c0_198], %141 {strides = array<i32>} : memref<64x128xf32, #tpu.memory_space<vmem>>, vector<64x128xf32>,
    %c1_199 = arith.constant 1 : index
    %c9_200 = arith.constant 9 : index
    %c0_201 = arith.constant 0 : index
    %143 = vector.load %arg8[%c1_199, %c9_200, %c0_201] : memref<10x24x128xf32, #tpu.memory_space<vmem>>, vector<8x8x128xf32>
    %144 = vector.shape_cast %143 : vector<8x8x128xf32> to vector<64x128xf32>
    %c5_202 = arith.constant 5 : index
    %c0_203 = arith.constant 0 : index
    %c0_204 = arith.constant 0 : index
    %145 = vector.load %arg4[%c5_202, %c0_203, %c0_204] : memref<9x128x128xf32, #tpu.memory_space<vmem>>, vector<1x128x128xf32>
    %146 = vector.shape_cast %145 : vector<1x128x128xf32> to vector<128x128xf32>
    %cst_205 = arith.constant dense<0.000000e+00> : vector<64x128xf32>
    %147 = tpu.matmul %144, %146, %cst_205 {dimension_numbers = #tpu.dot_dimension_numbers<[1], [0], [0], [1], [0, 0, 1, 1], [], []>} : vector<64x128xf32>, vector<128x128xf32>, vector<64x128xf32> -> vector<64x128xf32>
    %c0_206 = arith.constant 0 : index
    %c0_207 = arith.constant 0 : index
    %148 = vector.load %arg9[%c0_206, %c0_207] : memref<64x128xf32, #tpu.memory_space<vmem>>, vector<64x128xf32>
    %149 = arith.addf %148, %147 : vector<64x128xf32>
    %c0_208 = arith.constant 0 : index
    %c0_209 = arith.constant 0 : index
    %150 = vector.load %arg9[%c0_208, %c0_209] : memref<64x128xf32, #tpu.memory_space<vmem>>, vector<64x128xf32>
    tpu.vector_store %arg9[%c0_208, %c0_209], %149 {strides = array<i32>} : memref<64x128xf32, #tpu.memory_space<vmem>>, vector<64x128xf32>,
    %c2_210 = arith.constant 2 : index
    %c7_211 = arith.constant 7 : index
    %c0_212 = arith.constant 0 : index
    %151 = vector.load %arg8[%c2_210, %c7_211, %c0_212] : memref<10x24x128xf32, #tpu.memory_space<vmem>>, vector<8x8x128xf32>
    %152 = vector.shape_cast %151 : vector<8x8x128xf32> to vector<64x128xf32>
    %c6_213 = arith.constant 6 : index
    %c0_214 = arith.constant 0 : index
    %c0_215 = arith.constant 0 : index
    %153 = vector.load %arg4[%c6_213, %c0_214, %c0_215] : memref<9x128x128xf32, #tpu.memory_space<vmem>>, vector<1x128x128xf32>
    %154 = vector.shape_cast %153 : vector<1x128x128xf32> to vector<128x128xf32>
    %cst_216 = arith.constant dense<0.000000e+00> : vector<64x128xf32>
    %155 = tpu.matmul %152, %154, %cst_216 {dimension_numbers = #tpu.dot_dimension_numbers<[1], [0], [0], [1], [0, 0, 1, 1], [], []>} : vector<64x128xf32>, vector<128x128xf32>, vector<64x128xf32> -> vector<64x128xf32>
    %c0_217 = arith.constant 0 : index
    %c0_218 = arith.constant 0 : index
    %156 = vector.load %arg9[%c0_217, %c0_218] : memref<64x128xf32, #tpu.memory_space<vmem>>, vector<64x128xf32>
    %157 = arith.addf %156, %155 : vector<64x128xf32>
    %c0_219 = arith.constant 0 : index
    %c0_220 = arith.constant 0 : index
    %158 = vector.load %arg9[%c0_219, %c0_220] : memref<64x128xf32, #tpu.memory_space<vmem>>, vector<64x128xf32>
    tpu.vector_store %arg9[%c0_219, %c0_220], %157 {strides = array<i32>} : memref<64x128xf32, #tpu.memory_space<vmem>>, vector<64x128xf32>,
    %c2_221 = arith.constant 2 : index
    %c8_222 = arith.constant 8 : index
    %c0_223 = arith.constant 0 : index
    %159 = vector.load %arg8[%c2_221, %c8_222, %c0_223] : memref<10x24x128xf32, #tpu.memory_space<vmem>>, vector<8x8x128xf32>
    %160 = vector.shape_cast %159 : vector<8x8x128xf32> to vector<64x128xf32>
    %c7_224 = arith.constant 7 : index
    %c0_225 = arith.constant 0 : index
    %c0_226 = arith.constant 0 : index
    %161 = vector.load %arg4[%c7_224, %c0_225, %c0_226] : memref<9x128x128xf32, #tpu.memory_space<vmem>>, vector<1x128x128xf32>
    %162 = vector.shape_cast %161 : vector<1x128x128xf32> to vector<128x128xf32>
    %cst_227 = arith.constant dense<0.000000e+00> : vector<64x128xf32>
    %163 = tpu.matmul %160, %162, %cst_227 {dimension_numbers = #tpu.dot_dimension_numbers<[1], [0], [0], [1], [0, 0, 1, 1], [], []>} : vector<64x128xf32>, vector<128x128xf32>, vector<64x128xf32> -> vector<64x128xf32>
    %c0_228 = arith.constant 0 : index
    %c0_229 = arith.constant 0 : index
    %164 = vector.load %arg9[%c0_228, %c0_229] : memref<64x128xf32, #tpu.memory_space<vmem>>, vector<64x128xf32>
    %165 = arith.addf %164, %163 : vector<64x128xf32>
    %c0_230 = arith.constant 0 : index
    %c0_231 = arith.constant 0 : index
    %166 = vector.load %arg9[%c0_230, %c0_231] : memref<64x128xf32, #tpu.memory_space<vmem>>, vector<64x128xf32>
    tpu.vector_store %arg9[%c0_230, %c0_231], %165 {strides = array<i32>} : memref<64x128xf32, #tpu.memory_space<vmem>>, vector<64x128xf32>,
    %c2_232 = arith.constant 2 : index
    %c9_233 = arith.constant 9 : index
    %c0_234 = arith.constant 0 : index
    %167 = vector.load %arg8[%c2_232, %c9_233, %c0_234] : memref<10x24x128xf32, #tpu.memory_space<vmem>>, vector<8x8x128xf32>
    %168 = vector.shape_cast %167 : vector<8x8x128xf32> to vector<64x128xf32>
    %c8_235 = arith.constant 8 : index
    %c0_236 = arith.constant 0 : index
    %c0_237 = arith.constant 0 : index
    %169 = vector.load %arg4[%c8_235, %c0_236, %c0_237] : memref<9x128x128xf32, #tpu.memory_space<vmem>>, vector<1x128x128xf32>
    %170 = vector.shape_cast %169 : vector<1x128x128xf32> to vector<128x128xf32>
    %cst_238 = arith.constant dense<0.000000e+00> : vector<64x128xf32>
    %171 = tpu.matmul %168, %170, %cst_238 {dimension_numbers = #tpu.dot_dimension_numbers<[1], [0], [0], [1], [0, 0, 1, 1], [], []>} : vector<64x128xf32>, vector<128x128xf32>, vector<64x128xf32> -> vector<64x128xf32>
    %c0_239 = arith.constant 0 : index
    %c0_240 = arith.constant 0 : index
    %172 = vector.load %arg9[%c0_239, %c0_240] : memref<64x128xf32, #tpu.memory_space<vmem>>, vector<64x128xf32>
    %173 = arith.addf %172, %171 : vector<64x128xf32>
    %c0_241 = arith.constant 0 : index
    %c0_242 = arith.constant 0 : index
    %174 = vector.load %arg9[%c0_241, %c0_242] : memref<64x128xf32, #tpu.memory_space<vmem>>, vector<64x128xf32>
    tpu.vector_store %arg9[%c0_241, %c0_242], %173 {strides = array<i32>} : memref<64x128xf32, #tpu.memory_space<vmem>>, vector<64x128xf32>,
    %c0_243 = arith.constant 0 : index
    %c0_244 = arith.constant 0 : index
    %175 = vector.load %arg9[%c0_243, %c0_244] : memref<64x128xf32, #tpu.memory_space<vmem>>, vector<64x128xf32>
    %cst_245 = arith.constant 0.000000e+00 : f32
    %176 = vector.broadcast %cst_245 : f32 to vector<64x128xf32>
    %177 = arith.maximumf %175, %176 : vector<64x128xf32>
    %178 = vector.shape_cast %177 : vector<64x128xf32> to vector<8x8x128xf32>
    %c0_246 = arith.constant 0 : index
    %c0_247 = arith.constant 0 : index
    %c0_248 = arith.constant 0 : index
    %c0_249 = arith.constant 0 : index
    %179 = vector.load %arg6[%c0_246, %c0_247, %c0_248, %c0_249] : memref<1x8x8x128xf32, #tpu.memory_space<vmem>>, vector<1x8x8x128xf32>
    %180 = vector.shape_cast %179 : vector<1x8x8x128xf32> to vector<8x8x128xf32>
    %181 = vector.shape_cast %178 : vector<8x8x128xf32> to vector<1x8x8x128xf32>
    tpu.vector_store %arg6[%c0_246, %c0_247, %c0_248, %c0_249], %181 {strides = array<i32>} : memref<1x8x8x128xf32, #tpu.memory_space<vmem>>, vector<1x8x8x128xf32>,
    return
  }
  func.func @transform_0(%arg0: i32) -> (i32, i32, i32, i32, i32) {
    %c0_i32 = arith.constant 0 : i32
    %c0_i32_0 = arith.constant 0 : i32
    %c0_i32_1 = arith.constant 0 : i32
    %c0_i32_2 = arith.constant 0 : i32
    %c0_i32_3 = arith.constant 0 : i32
    return %arg0, %c0_i32, %c0_i32_0, %c0_i32_1, %c0_i32_2 : i32, i32, i32, i32, i32
  }
  func.func @transform_1(%arg0: i32) -> (i32, i32, i32) {
    %c0_i32 = arith.constant 0 : i32
    %c0_i32_0 = arith.constant 0 : i32
    %c0_i32_1 = arith.constant 0 : i32
    %c0_i32_2 = arith.constant 0 : i32
    return %c0_i32, %c0_i32_0, %c0_i32_1 : i32, i32, i32
  }
  func.func @transform_2(%arg0: i32) -> (i32, i32) {
    %c0_i32 = arith.constant 0 : i32
    %c0_i32_0 = arith.constant 0 : i32
    %c0_i32_1 = arith.constant 0 : i32
    return %c0_i32, %c0_i32_0 : i32, i32
  }
  func.func @transform_3(%arg0: i32) -> (i32, i32, i32) {
    %c0_i32 = arith.constant 0 : i32
    %c0_i32_0 = arith.constant 0 : i32
    %c0_i32_1 = arith.constant 0 : i32
    %c0_i32_2 = arith.constant 0 : i32
    return %c0_i32, %c0_i32_0, %c0_i32_1 : i32, i32, i32
  }
  func.func @transform_4(%arg0: i32) -> (i32, i32) {
    %c0_i32 = arith.constant 0 : i32
    %c0_i32_0 = arith.constant 0 : i32
    %c0_i32_1 = arith.constant 0 : i32
    return %c0_i32, %c0_i32_0 : i32, i32
  }
  func.func @transform_5(%arg0: i32) -> (i32, i32, i32, i32) {
    %c0_i32 = arith.constant 0 : i32
    %c0_i32_0 = arith.constant 0 : i32
    %c0_i32_1 = arith.constant 0 : i32
    %c0_i32_2 = arith.constant 0 : i32
    return %arg0, %c0_i32, %c0_i32_0, %c0_i32_1 : i32, i32, i32, i32
  }
}

</mosaic_0001>

<bundles_post_ra>
// kernel: tpu_custom_call.1
= control target key start
LH: loop header
LB: loop body
LE: loop exit
PB: predicated region body
PF: predicated region fallthrough
CT: control target
= control target key end

     0   :  { %10 = vsyncpa [#allocation6], 0  ;;  %s3232_s0 = inlined_call_operand.vmem [shape: f32[2,4,8,8,4], index: 0, kind: input, shape index: {}]   ;;  %s3233_s1 = inlined_call_operand.vmem [shape: f32[9,4,128], index: 1, kind: input, shape index: {}]   ;;  %s3234_s2 = inlined_call_operand.vmem [shape: f32[1,128], index: 2, kind: input, shape index: {}]   ;;  %s3235_s3 = inlined_call_operand.hbm [shape: f32[9,128,128], index: 3, kind: input, shape index: {}]   ;;  %s3236_s4 = inlined_call_operand.vmem [shape: f32[1,128], index: 4, kind: input, shape index: {}]   ;;  %s3237_s5 = inlined_call_operand.hbm [shape: f32[2,8,8,128], index: 5, kind: output, shape index: {}]  }
   0x1   :  { %11 = vsyncpa [#allocation7], 0 }
   0x2   :  { %13 = vsyncpa [#allocation7 + $0x1], 0  ;;  %s2530_s18 = smov 0   ;;  %s2532_s19 = smov 0  }
   0x3   :  { %s2534_s20 = smov 0   ;;  %s2536_s21 = smov 0  }
   0x4 LB: > { %s2551_s22 = sadd.s32 4294967295, %s2492_s21   ;;  %s2207_s23 = sadd.s32 4294967294, %s2492_s21   ;;  %s2492_s21 = sphi %s2536_s21, %s3243_s21   ;;  %s2488_s20 = sphi %s2534_s20, %s3242_s20   ;;  %s2484_s19 = sphi %s2532_s19, %s3241_s19   ;;  %s2480_s18 = sphi %s2530_s18, %s3240_s18  }
   0x5   : > { %s2555_s24 = sadd.s32 1, %s2492_s21   ;;  %s136_s25 = sadd.s32 1, %s2488_s20 }
   0x6   : > { %s133_s26 = ssub.s32 %s2492_s21, %s2555_s24  ;;  %p146_p0 = scmp.ne.s32.totalorder %s2488_s20, %s2484_s19 }
   0x7   : > { %p134_p1 = scmp.eq.s32.totalorder %s133_s26, 0  ;;  %p147_p2 = scmp.eq.s32.totalorder %s2551_s22, 1 }
   0x8   : > { %p152_p3 = scmp.ne.s32.totalorder %s2484_s19, %s2480_s18  ;;  %p153_p4 = scmp.eq.s32.totalorder %s2207_s23, 1 }
   0x9   : > { %s2566_s27 = scalar_select %p134_p1, %s2488_s20, %s136_s25  }
   0xa   : > { %p2568_p5 = por %p147_p2, %p146_p0  ;;  %p2572_p6 = por %p153_p4, %p152_p3 }
   0xb   : > { %p2208_p7 = scmp.ge.s32.totalorder %s2492_s21, 1  ;;  %p160_p8 = scmp.lt.s32.totalorder %s2492_s21, 3 }
   0xc   : > { %p2352_p9 = scmp.eq.s32.totalorder %s2551_s22, 0  ;;  %s177_s7 = sshll.u32 %s3235_s3, 4  ;;  %s178_s7 = int_to_ptr.hbm [resolvable:$true] %s177_s7 }
   0xd   : > { %p161_p10 = pnand %p2208_p7, %p160_p8  ;;  %s2494_s8 = smov [#allocation5]  }
   0xe   : > { %s179_s9 = sshll.u32 %s2494_s8, 4  ;;  %s2495_s10 = smov 128   ;;  %s180_s9 = int_to_ptr.vmem [resolvable:$true] %s179_s9 }
   0xf   : > { %p2344_p11 = pneg %p161_p10  ;;  %s2496_s11 = smov 8  }
  0x10   : > { %206 = sbr.rel (%p161_p10) target bundleno = 626 (0x272), region = 40 }
  0x11   : > { %p2345_p12 = pnand %p2352_p9, %p2344_p11 }
  0x13   : > { %2347 = dma.hbm_to_vmem [thread:$0]  (!%p2345_p12), %s178_s7, 18432, %s180_s9, [#allocation6], %s2495_s10, %s2495_s10, %s2496_s11  }
  0x15   : > { %2471 = dma.done.wait (%p2352_p9), [#allocation6], 18432  }
  0x16   : > { %2473 = vsyncadd (%p2352_p9), [#allocation6], 4294948864  ;;  %p235_p13 = scmp.lt.s32.totalorder %s2551_s22, 1  ;;  %vm299_vm0 = vcmask 31744   ;;  %v2497_v0 = vmov 0.0   ;;  %vm373_vm1 = vcmask 1043456  }
  0x17   : > { %311 = vst.msk [vmem:[#allocation2 + $0x60] sm:$0xff] %vm299_vm0, %v2497_v0  ;;  %v344_v1 = vld [vmem:[%s3233_s1] sm:$0xf]  ;;  %v2249_v7 = vld [vmem:[%s3233_s1 + $0x4] sm:$0xf]  ;;  %s232_s7 = sand.u32 1, %s2484_s19  }
  0x18   : > { %s236_s12 = scalar_select %p235_p13, %s2551_s22, 1  ;;  %300 = vst.msk [vmem:[#allocation2] sm:$0xff] %vm299_vm0, %v2497_v0  ;;  %2336 = vmatpush.msk.msra.mxu2 %vm373_vm1, %v344_v1  ;;  %2240 = vmatpush.msk.msra.mxu0 %vm373_vm1, %v344_v1  ;;  %v2259_v9 = vld [vmem:[%s3233_s1 + $0x8] sm:$0xf]  ;;  %v2269_v11 = vld [vmem:[%s3233_s1 + $0xc] sm:$0xf] }
  0x19   : > { %301 = vst.msk [vmem:[#allocation2 + $0x8] sm:$0xff] %vm299_vm0, %v2497_v0  ;;  %2337 = vmatpush.msk.msra.mxu3 %vm373_vm1, %v2249_v7  ;;  %2250 = vmatpush.msk.msra.mxu1 %vm373_vm1, %v2249_v7  ;;  %v2279_v14 = vld [vmem:[%s3233_s1 + $0x10] sm:$0xf]  ;;  %v2299_v58 = vld [vmem:[%s3233_s1 + $0x18] sm:$0xf]  ;;  %s2213_s8 = sshll.u32 %s232_s7, 6 }
  0x1a   : > { %s2334_s13 = sshll.u32 %s236_s12, 8  ;;  %302 = vst.msk [vmem:[#allocation2 + $0x10] sm:$0xff] %vm299_vm0, %v2497_v0  ;;  %2260 = vmatpush.msk.msrb.mxu2 %vm373_vm1, %v2259_v9  ;;  %2280 = vmatpush.msk.msrb.mxu0 %vm373_vm1, %v2279_v14  ;;  %v2309_v59 = vld [vmem:[%s3233_s1 + $0x1c] sm:$0xf]  ;;  %v2319_v63 = vld [vmem:[%s3233_s1 + $0x20] sm:$0xf] }
  0x1b   : > { %s2601_s16 = scalar_lea.vmem %s3232_s0, %s2334_s13  ;;  %304 = vst.msk [vmem:[#allocation2 + $0xd8] sm:$0xff] %vm299_vm0, %v2497_v0  ;;  %2270 = vmatpush.msk.msrb.mxu3 %vm373_vm1, %v2269_v11  ;;  %s3162_s9 = scalar_lea.vmem [#allocation8], %s2213_s8 }
  0x1c   : > { %305 = vst.msk [vmem:[#allocation2 + $0xe0] sm:$0xff] %vm299_vm0, %v2497_v0  ;;  %v243_v2 = vld [vmem:[%s2601_s16 + $0x18] sm:$0xff]  ;;  %v244_v16 = vld [vmem:[%s2601_s16 + $0x20] sm:$0xff]  ;;  %v245_v20 = vld [vmem:[%s2601_s16 + $0x28] sm:$0xff]  ;;  %s2335_s10 = sshll.u32 %s2551_s22, 6  ;;  %s2130_s14 = sshll.u32 %s3162_s9, 4  ;;  %s2131_s14 = int_to_ptr.vmem [resolvable:$true] %s2130_s14 }
  0x1d   : > { %v2219_v3 = vld [vmem:[%s2601_s16 + $0x58] sm:$0xff]  ;;  %306 = vst.msk [vmem:[#allocation2 + $0xe8] sm:$0xff] %vm299_vm0, %v2497_v0  ;;  %v2220_v17 = vld [vmem:[%s2601_s16 + $0x60] sm:$0xff]  ;;  %v2221_v21 = vld [vmem:[%s2601_s16 + $0x68] sm:$0xff]  ;;  %s2129_s13 = scalar_lea.hbm %s3237_s5, %s2335_s10  ;;  %s2118_s22 = scalar_lea.sflag [#allocation7], %s232_s7 }
  0x1e   : > { %v260_v4 = vmax.f32 %v243_v2, %v2219_v3  ;;  %v2227_v5 = vld [vmem:[%s2601_s16 + $0x98] sm:$0xff]  ;;  %308 = vst.msk [vmem:[#allocation2 + $0x18] sm:$0xff] %vm299_vm0, %v2497_v0  ;;  %v2228_v18 = vld [vmem:[%s2601_s16 + $0xa0] sm:$0xff]  ;;  %v2229_v22 = vld [vmem:[%s2601_s16 + $0xa8] sm:$0xff]  ;;  %v261_v31 = vmax.f32 %v244_v16, %v2220_v17  ;;  %v262_v36 = vmax.f32 %v245_v20, %v2221_v21  ;;  %s2132_s15 = sshll.u32 %s2129_s13, 4  ;;  %s2446_s26 = scalar_lea.hbm %s3237_s5, 128  ;;  %s2133_s15 = int_to_ptr.hbm [resolvable:$true] %s2132_s15 }
  0x1f   : > { %v2235_v6 = vld [vmem:[%s2601_s16 + $0xd8] sm:$0xff]  ;;  %309 = vst.msk [vmem:[#allocation2 + $0x30] sm:$0xff] %vm299_vm0, %v2497_v0  ;;  %v2236_v19 = vld [vmem:[%s2601_s16 + $0xe0] sm:$0xff]  ;;  %v2237_v23 = vld [vmem:[%s2601_s16 + $0xe8] sm:$0xff]  ;;  %s2440_s17 = sshra.s32 %s2133_s15, 4  ;;  %s2441_s17 = int_to_ptr.hbm [resolvable:$true] %s2440_s17 }
  0x20   : > { %v286_v8 = vmax.f32 %v2227_v5, %v2235_v6  ;;  %310 = vst.msk [vmem:[#allocation2 + $0x48] sm:$0xff] %vm299_vm0, %v2497_v0  ;;  %v426_v15 = vld [vmem:[#allocation2 + $0x8] sm:$0xff]  ;;  %v240_v24 = vld [vmem:[%s2601_s16] sm:$0xff]  ;;  %v246_v28 = vld [vmem:[%s2601_s16 + $0x30] sm:$0xff]  ;;  %v287_v32 = vmax.f32 %v2228_v18, %v2236_v19  ;;  %v288_v37 = vmax.f32 %v2229_v22, %v2237_v23  ;;  %s2442_s23 = scalar_lea.hbm %s2441_s17, 64  ;;  %p2447_p3 = scmp.lt.s32.totalorder %s2441_s17, %s3237_s5 }
  0x21   : > { %312 = vst.msk [vmem:[#allocation2 + $0x78] sm:$0xff] %vm299_vm0, %v2497_v0  ;;  %2251 = vmatmul.msk.f32.vlgmr.msra.gmra.mxu1 %vm299_vm0, %v426_v15  ;;  %v2216_v25 = vld [vmem:[%s2601_s16 + $0x40] sm:$0xff]  ;;  %v2222_v29 = vld [vmem:[%s2601_s16 + $0x70] sm:$0xff]  ;;  %v241_v34 = vld [vmem:[%s2601_s16 + $0x8] sm:$0xff]  ;;  %p2443_p0 = scmp.ne.s32.totalorder %s2441_s17, %s2442_s23  ;;  %p2448_p4 = scmp.lt.s32.totalorder %s2446_s26, %s2442_s23 }
  0x22   : > { %v294_v10 = vmax.f32 %v260_v4, %v286_v8  ;;  %313 = vst.msk [vmem:[#allocation2 + $0x90] sm:$0xff] %vm299_vm0, %v2497_v0  ;;  %v2224_v26 = vld [vmem:[%s2601_s16 + $0x80] sm:$0xff]  ;;  %v2230_v30 = vld [vmem:[%s2601_s16 + $0xb0] sm:$0xff]  ;;  %v2217_v35 = vld [vmem:[%s2601_s16 + $0x48] sm:$0xff]  ;;  %v257_v41 = vmax.f32 %v240_v24, %v2216_v25  ;;  %v263_v46 = vmax.f32 %v246_v28, %v2222_v29  ;;  %v295_v48 = vmax.f32 %v261_v31, %v287_v32 }
  0x23   : > { %314 = vst.msk [vmem:[#allocation2 + $0xa8] sm:$0xff] %vm299_vm0, %v2497_v0  ;;  %v2232_v27 = vld [vmem:[%s2601_s16 + $0xc0] sm:$0xff]  ;;  %v2238_v33 = vld [vmem:[%s2601_s16 + $0xf0] sm:$0xff]  ;;  %v2225_v38 = vld [vmem:[%s2601_s16 + $0x88] sm:$0xff]  ;;  %v258_v49 = vmax.f32 %v241_v34, %v2217_v35  ;;  %v296_v51 = vmax.f32 %v262_v36, %v288_v37  ;;  %p2444_p1 = pnand %p2443_p0, %p2568_p5  ;;  %p2449_p7 = por %p2448_p4, %p2447_p3 }
  0x24   : > { %331 = vst.msk [vmem:[#allocation2 + $0x68] sm:$0xff] %vm299_vm0, %v294_v10  ;;  %v2233_v39 = vld [vmem:[%s2601_s16 + $0xc8] sm:$0xff]  ;;  %v242_v40 = vld [vmem:[%s2601_s16 + $0x10] sm:$0xff]  ;;  %v283_v42 = vmax.f32 %v2224_v26, %v2232_v27  ;;  %v289_v47 = vmax.f32 %v2230_v30, %v2238_v33  ;;  %v247_v17 = vld [vmem:[%s2601_s16 + $0x38] sm:$0xff] }
  0x25   : > { %315 = vst.msk [vmem:[#allocation2 + $0xc0] sm:$0xff] %vm299_vm0, %v2497_v0  ;;  %v2218_v43 = vld [vmem:[%s2601_s16 + $0x50] sm:$0xff]  ;;  %v284_v50 = vmax.f32 %v2225_v38, %v2233_v39  ;;  %v2223_v18 = vld [vmem:[%s2601_s16 + $0x78] sm:$0xff]  ;;  %p2445_p2 = pneg %p2444_p1 }
  0x26   : > { %318 = vst.msk [vmem:[#allocation2 + $0x28] sm:$0xff] %vm299_vm0, %v2497_v0  ;;  %v2226_v44 = vld [vmem:[%s2601_s16 + $0x90] sm:$0xff]  ;;  %v259_v52 = vmax.f32 %v242_v40, %v2218_v43  ;;  %v291_v54 = vmax.f32 %v257_v41, %v283_v42  ;;  %v297_v56 = vmax.f32 %v263_v46, %v289_v47  ;;  %v2231_v19 = vld [vmem:[%s2601_s16 + $0xb8] sm:$0xff]  ;;  %v264_v20 = vmax.f32 %v247_v17, %v2223_v18  ;;  %v1316_v41 = vld [vmem:[#allocation5 + $0x68] sm:$0xff] }
  0x27   : > { %319 = vst.msk [vmem:[#allocation2 + $0x40] sm:$0xff] %vm299_vm0, %v2497_v0  ;;  %v2234_v45 = vld [vmem:[%s2601_s16 + $0xd0] sm:$0xff]  ;;  %v292_v57 = vmax.f32 %v258_v49, %v284_v50  ;;  %v2239_v21 = vld [vmem:[%s2601_s16 + $0xf8] sm:$0xff]  ;;  %v1046_v43 = vld [vmem:[#allocation2 + $0xe0] sm:$0xff]  ;;  %p2450_p8 = pnand %p2449_p7, %p2445_p2 }
  0x28   : > { %320 = vst.msk [vmem:[#allocation2 + $0x58] sm:$0xff] %vm299_vm0, %v2497_v0  ;;  %v285_v53 = vmax.f32 %v2226_v44, %v2234_v45  ;;  %v2289_v3 = vld [vmem:[%s3233_s1 + $0x14] sm:$0xf]  ;;  %v290_v22 = vmax.f32 %v2231_v19, %v2239_v21  ;;  %v1318_v36 = vld [vmem:[#allocation5 + $0x78] sm:$0xff]  ;;  %v1315_v46 = vld [vmem:[#allocation5 + $0x60] sm:$0xff] }
  0x29   : > { %321 = vst.msk [vmem:[#allocation2 + $0x70] sm:$0xff] %vm299_vm0, %v2497_v0  ;;  %2290 = vmatpush.msk.msrb.mxu1 %vm373_vm1, %v2289_v3  ;;  %v1317_v38 = vld [vmem:[#allocation5 + $0x70] sm:$0xff]  ;;  %v1314_v49 = vld [vmem:[#allocation5 + $0x58] sm:$0xff]  ;;  %v1308_v18 = vld [vmem:[#allocation5 + $0x28] sm:$0xff] }
  0x2a   : > { %322 = vst.msk [vmem:[#allocation2 + $0x88] sm:$0xff] %vm299_vm0, %v2497_v0  ;;  %v293_v60 = vmax.f32 %v259_v52, %v285_v53  ;;  %v298_v24 = vmax.f32 %v264_v20, %v290_v22  ;;  %v1485_v3 = vld [vmem:[#allocation5 + $0x170] sm:$0xff]  ;;  %v1576_v20 = vld [vmem:[#allocation5 + $0x1f8] sm:$0xff]  ;;  %v1480_v22 = vld [vmem:[#allocation5 + $0x148] sm:$0xff] }
  0x2b   : > { %v2654_v12 = vld [vmem:[#allocation2 + $0x67] sm:$0xff]  ;;  %323 = vst.msk [vmem:[#allocation2 + $0xa0] sm:$0xff] %vm299_vm0, %v2497_v0  ;;  %1323 = vmatpush.msra.mxu1 %v1318_v36  ;;  %v1481_v19 = vld [vmem:[#allocation5 + $0x150] sm:$0xff]  ;;  %v1388_v21 = vld [vmem:[#allocation5 + $0xb8] sm:$0xff] }
  0x2c   : > { %v2658_v13 = vld [vmem:[#allocation2 + $0x68] sm:$0xff]  ;;  %2245 = vmatmul.msk.f32.vlgmr.msra.gmra.mxu2 %vm299_vm0, %v2654_v12  ;;  %324 = vst.msk [vmem:[#allocation2 + $0xb8] sm:$0xff] %vm299_vm0, %v2497_v0  ;;  %v1385_v36 = vld [vmem:[#allocation5 + $0xa0] sm:$0xff] }
  0x2d   : > { %2255 = vmatmul.msk.f32.vlgmr.msra.gmra.mxu3 %vm299_vm0, %v2658_v13  ;;  %325 = vst.msk [vmem:[#allocation2 + $0xd0] sm:$0xff] %vm299_vm0, %v2497_v0  ;;  %2300 = vmatpush.msk.msra.mxu2 %vm373_vm1, %v2299_v58 }
  0x2e   : > { %1244 = vst [vmem:[#allocation3 + $0x8] sm:$0xff] %v2497_v0  ;;  %2310 = vmatpush.msk.msra.mxu3 %vm373_vm1, %v2309_v59  ;;  %1324 = vmatpush.msra.mxu1 %v1317_v38  ;;  %v1311_v59 = vld [vmem:[#allocation5 + $0x40] sm:$0xff] }
  0x2f   : > { %1248 = vst [vmem:[#allocation3 + $0xe0] sm:$0xff] %v2497_v0 }
  0x30   : > { %1251 = vst [vmem:[#allocation3 + $0x18] sm:$0xff] %v2497_v0  ;;  %v532_v25 = vld [vmem:[#allocation2 + $0x69] sm:$0xff]  ;;  %1325 = vmatpush.msra.mxu1 %v1316_v41 }
  0x31   : > { %1252 = vst [vmem:[#allocation3 + $0x30] sm:$0xff] %v2497_v0 }
  0x32   : > { %1253 = vst [vmem:[#allocation3 + $0x48] sm:$0xff] %v2497_v0  ;;  %1326 = vmatpush.msra.mxu1 %v1315_v46  ;;  %v1572_v46 = vld [vmem:[#allocation5 + $0x1d8] sm:$0xff] }
  0x33   : > { %1254 = vst [vmem:[#allocation3 + $0x60] sm:$0xff] %v2497_v0 }
  0x34   : > { %1255 = vst [vmem:[#allocation3 + $0x78] sm:$0xff] %v2497_v0  ;;  %1327 = vmatpush.msra.mxu1 %v1314_v49  ;;  %v1384_v49 = vld [vmem:[#allocation5 + $0x98] sm:$0xff] }
  0x35   : > { %1256 = vst [vmem:[#allocation3 + $0x90] sm:$0xff] %v2497_v0 }
  0x36   : > { %1257 = vst [vmem:[#allocation3 + $0xa8] sm:$0xff] %v2497_v0 }
  0x37   : > { %1258 = vst [vmem:[#allocation3 + $0xc0] sm:$0xff] %v2497_v0 }
  0x38   : > { %1261 = vst [vmem:[#allocation3 + $0x28] sm:$0xff] %v2497_v0 }
  0x39   : > { %1262 = vst [vmem:[#allocation3 + $0x40] sm:$0xff] %v2497_v0 }
  0x3a   : > { %1263 = vst [vmem:[#allocation3 + $0x58] sm:$0xff] %v2497_v0 }
  0x3b   : > { %1264 = vst [vmem:[#allocation3 + $0x70] sm:$0xff] %v2497_v0 }
  0x3c   : > { %1265 = vst [vmem:[#allocation3 + $0x88] sm:$0xff] %v2497_v0 }
  0x3d   : > { %1266 = vst [vmem:[#allocation3 + $0xa0] sm:$0xff] %v2497_v0 }
  0x3e   : > { %1267 = vst [vmem:[#allocation3 + $0xb8] sm:$0xff] %v2497_v0 }
  0x3f   : > { %1268 = vst [vmem:[#allocation3 + $0xd0] sm:$0xff] %v2497_v0 }
  0x40   : > { %307 = vst.msk [vmem:[#allocation2] sm:$0xff] %vm299_vm0, %v2497_v0 }
  0x41   : > { %316 = vst.msk [vmem:[#allocation2 + $0xd8] sm:$0xff] %vm299_vm0, %v2497_v0 }
  0x42   : > { %317 = vst.msk [vmem:[#allocation2 + $0x10] sm:$0xff] %vm299_vm0, %v2497_v0 }
  0x43   : > { %326 = vst.msk [vmem:[#allocation2 + $0xe8] sm:$0xff] %vm299_vm0, %v2497_v0 }
  0x44   : > { %1250 = vst [vmem:[#allocation3] sm:$0xff] %v2497_v0 }
  0x45   : > { %1259 = vst [vmem:[#allocation3 + $0xd8] sm:$0xff] %v2497_v0 }
  0x46   : > { %1260 = vst [vmem:[#allocation3 + $0x10] sm:$0xff] %v2497_v0 }
  0x47   : > { %1269 = vst [vmem:[#allocation3 + $0xe8] sm:$0xff] %v2497_v0  ;;  %v336_v55 = vld [vmem:[#allocation2 + $0x7] sm:$0xff] }
  0x48   : > { %332 = vst.msk [vmem:[#allocation2 + $0x80] sm:$0xff] %vm299_vm0, %v295_v48  ;;  %2241 = vmatmul.msk.f32.vlgmr.msra.gmra.mxu0 %vm299_vm0, %v336_v55  ;;  %v944_v42 = vld [vmem:[#allocation2 + $0xdf] sm:$0xff] }
  0x49   : > { %333 = vst.msk [vmem:[#allocation2 + $0x98] sm:$0xff] %vm299_vm0, %v296_v51  ;;  %2320 = vmatpush.msk.msra.mxu0 %vm373_vm1, %v2319_v63  ;;  %v528_v14 = vld [vmem:[#allocation2 + $0x9] sm:$0xff]  ;;  %v1396_v55 = vld [vmem:[#allocation5 + $0xf8] sm:$0xff] }
  0x4a   : > { %328 = vst.msk [vmem:[#allocation2 + $0x20] sm:$0xff] %vm299_vm0, %v291_v54  ;;  %v1148_v45 = vld [vmem:[#allocation2 + $0xe1] sm:$0xff]  ;;  %v1313_v51 = vld [vmem:[#allocation5 + $0x50] sm:$0xff] }
  0x4b   : > { %334 = vst.msk [vmem:[#allocation2 + $0xb0] sm:$0xff] %vm299_vm0, %v297_v56  ;;  %1328 = vmatpush.msra.mxu1 %v1313_v51  ;;  %v1312_v54 = vld [vmem:[#allocation5 + $0x48] sm:$0xff]  ;;  %v1395_v56 = vld [vmem:[#allocation5 + $0xf0] sm:$0xff] }
  0x4c   : > { %329 = vst.msk [vmem:[#allocation2 + $0x38] sm:$0xff] %vm299_vm0, %v292_v57  ;;  %v1476_v51 = vld [vmem:[#allocation5 + $0x128] sm:$0xff] }
  0x4d   : > { %330 = vst.msk [vmem:[#allocation2 + $0x50] sm:$0xff] %vm299_vm0, %v293_v60  ;;  %1329 = vmatpush.msra.mxu1 %v1312_v54  ;;  %v1394_v60 = vld [vmem:[#allocation5 + $0xe8] sm:$0xff]  ;;  %v1571_v54 = vld [vmem:[#allocation5 + $0x1d0] sm:$0xff] }
  0x4e   : > { %335 = vst.msk [vmem:[#allocation2 + $0xc8] sm:$0xff] %vm299_vm0, %v298_v24  ;;  %v1387_v24 = vld [vmem:[#allocation5 + $0xb0] sm:$0xff] }
  0x4f   : > { %v2744_v61 = vld [vmem:[#allocation2 + $0x7f] sm:$0xff]  ;;  %1330 = vmatpush.msra.mxu1 %v1311_v59  ;;  %v1305_v59 = vld [vmem:[#allocation5 + $0x10] sm:$0xff] }
  0x50   : > { %v2746_v62 = vld [vmem:[#allocation2 + $0x80] sm:$0xff]  ;;  %2246 = vmatmul.msk.f32.gmra.mxu2 %vm299_vm0, %v2744_v61  ;;  %v2762_v4 = vld [vmem:[#allocation2 + $0x97] sm:$0xff] }
  0x51   : > { %2256 = vmatmul.msk.f32.gmra.mxu3 %vm299_vm0, %v2746_v62  ;;  %v337_v1 = vld [vmem:[#allocation2 + $0x1f] sm:$0xff] }
  0x52   : > { %v427_v2 = vld [vmem:[#allocation2 + $0x20] sm:$0xff]  ;;  %2242 = vmatmul.msk.f32.gmra.mxu0 %vm299_vm0, %v337_v1  ;;  %v2764_v5 = vld [vmem:[#allocation2 + $0x98] sm:$0xff]  ;;  %v2778_v8 = vld [vmem:[#allocation2 + $0xaf] sm:$0xff] }
  0x53   : > { %2252 = vmatmul.msk.f32.gmra.mxu1 %vm299_vm0, %v427_v2  ;;  %v2766_v6 = vld [vmem:[#allocation2 + $0x37] sm:$0xff]  ;;  %v529_v15 = vld [vmem:[#allocation2 + $0x21] sm:$0xff] }
  0x54   : > { %v2768_v7 = vld [vmem:[#allocation2 + $0x38] sm:$0xff]  ;;  %v2780_v9 = vld [vmem:[#allocation2 + $0xb0] sm:$0xff]  ;;  %v533_v26 = vld [vmem:[#allocation2 + $0x81] sm:$0xff] }
  0x55   : > { %v339_v10 = vld [vmem:[#allocation2 + $0x4f] sm:$0xff]  ;;  %v530_v16 = vld [vmem:[#allocation2 + $0x39] sm:$0xff]  ;;  %v637_v29 = vld [vmem:[#allocation2 + $0xc7] sm:$0xff] }
  0x56   : > { %v429_v11 = vld [vmem:[#allocation2 + $0x50] sm:$0xff]  ;;  %v534_v27 = vld [vmem:[#allocation2 + $0x99] sm:$0xff]  ;;  %v739_v30 = vld [vmem:[#allocation2 + $0xc8] sm:$0xff] }
  0x57   : > { %v531_v23 = vld [vmem:[#allocation2 + $0x51] sm:$0xff]  ;;  %v841_v31 = vld [vmem:[#allocation2 + $0xc9] sm:$0xff] }
  0x58   : > { %2247 = vmatmul.msk.f32.gmra.mxu2 %vm299_vm0, %v2762_v4  ;;  %v535_v28 = vld [vmem:[#allocation2 + $0xb1] sm:$0xff] }
  0x59   : > { %2257 = vmatmul.msk.f32.gmra.mxu3 %vm299_vm0, %v2764_v5 }
  0x5a   : > { %2243 = vmatmul.msk.f32.gmra.mxu0 %vm299_vm0, %v2766_v6 }
  0x5b   : > { %2253 = vmatmul.msk.f32.gmra.mxu1 %vm299_vm0, %v2768_v7 }
  0x60   : > { %2248 = vmatmul.msk.f32.gmra.mxu2 %vm299_vm0, %v2778_v8 }
  0x61   : > { %2258 = vmatmul.msk.f32.gmra.mxu3 %vm299_vm0, %v2780_v9 }
  0x62   : > { %2244 = vmatmul.msk.f32.gmra.mxu0 %vm299_vm0, %v339_v10 }
  0x63   : > { %2254 = vmatmul.msk.f32.gmra.mxu1 %vm299_vm0, %v429_v11 }
  0x68   : > { %2261 = vmatmul.msk.f32.vlgmr.msrb.gmra.mxu2 %vm299_vm0, %v528_v14  ;;  %v1482_v14 = vld [vmem:[#allocation5 + $0x158] sm:$0xff] }
  0x69   : > { %2271 = vmatmul.msk.f32.vlgmr.msrb.gmra.mxu3 %vm299_vm0, %v337_v1  ;;  %1397 = vmatpush.msrb.mxu2 %v1396_v55  ;;  %v1383_v55 = vld [vmem:[#allocation5 + $0x90] sm:$0xff] }
  0x6a   : > { %2281 = vmatmul.msk.f32.vlgmr.msrb.gmra.mxu0 %vm299_vm0, %v427_v2  ;;  %v1310_v2 = vld [vmem:[#allocation5 + $0x38] sm:$0xff] }
  0x6b   : > { %2291 = vmatmul.msk.f32.vlgmr.msrb.gmra.mxu1 %vm299_vm0, %v529_v15  ;;  %1398 = vmatpush.msrb.mxu2 %v1395_v56 }
  0x6c   : > { %1331 = vmatpush.msra.mxu1 %v1310_v2  ;;  %1577 = vmatpush.msrb.mxu0 %v1576_v20  ;;  %v1474_v2 = vld [vmem:[#allocation5 + $0x118] sm:$0xff]  ;;  %v1471_v20 = vld [vmem:[#allocation5 + $0x100] sm:$0xff] }
  0x6d   : > { %1399 = vmatpush.msrb.mxu2 %v1394_v60  ;;  %v1475_v60 = vld [vmem:[#allocation5 + $0x120] sm:$0xff] }
  0x70   : > { %2262 = vmatmul.msk.f32.gmra.mxu2 %vm299_vm0, %v529_v15  ;;  %v1389_v15 = vld [vmem:[#allocation5 + $0xc0] sm:$0xff] }
  0x71   : > { %2272 = vmatmul.msk.f32.gmra.mxu3 %vm299_vm0, %v2766_v6 }
  0x72   : > { %2282 = vmatmul.msk.f32.gmra.mxu0 %vm299_vm0, %v2768_v7 }
  0x73   : > { %2292 = vmatmul.msk.f32.gmra.mxu1 %vm299_vm0, %v530_v16 }
  0x78   : > { %2263 = vmatmul.msk.f32.gmra.mxu2 %vm299_vm0, %v530_v16 }
  0x79   : > { %2273 = vmatmul.msk.f32.gmra.mxu3 %vm299_vm0, %v339_v10 }
  0x7a   : > { %2283 = vmatmul.msk.f32.gmra.mxu0 %vm299_vm0, %v429_v11 }
  0x7b   : > { %2293 = vmatmul.msk.f32.gmra.mxu1 %vm299_vm0, %v531_v23 }
  0x80   : > { %2264 = vmatmul.msk.f32.gmra.mxu2 %vm299_vm0, %v531_v23 }
  0x81   : > { %2274 = vmatmul.msk.f32.gmra.mxu3 %vm299_vm0, %v2654_v12 }
  0x82   : > { %2284 = vmatmul.msk.f32.gmra.mxu0 %vm299_vm0, %v2658_v13 }
  0x83   : > { %2294 = vmatmul.msk.f32.gmra.mxu1 %vm299_vm0, %v532_v25 }
  0x88   : > { %2265 = vmatmul.msk.f32.gmra.mxu2 %vm299_vm0, %v532_v25 }
  0x89   : > { %2275 = vmatmul.msk.f32.gmra.mxu3 %vm299_vm0, %v2744_v61 }
  0x8a   : > { %2285 = vmatmul.msk.f32.gmra.mxu0 %vm299_vm0, %v2746_v62 }
  0x8b   : > { %2295 = vmatmul.msk.f32.gmra.mxu1 %vm299_vm0, %v533_v26 }
  0x90   : > { %2266 = vmatmul.msk.f32.gmra.mxu2 %vm299_vm0, %v533_v26 }
  0x91   : > { %2276 = vmatmul.msk.f32.gmra.mxu3 %vm299_vm0, %v2762_v4 }
  0x92   : > { %2286 = vmatmul.msk.f32.gmra.mxu0 %vm299_vm0, %v2764_v5 }
  0x93   : > { %2296 = vmatmul.msk.f32.gmra.mxu1 %vm299_vm0, %v534_v27 }
  0x98   : > { %2267 = vmatmul.msk.f32.gmra.mxu2 %vm299_vm0, %v534_v27 }
  0x99   : > { %2277 = vmatmul.msk.f32.gmra.mxu3 %vm299_vm0, %v2778_v8 }
  0x9a   : > { %2287 = vmatmul.msk.f32.gmra.mxu0 %vm299_vm0, %v2780_v9 }
  0x9b   : > { %2297 = vmatmul.msk.f32.gmra.mxu1 %vm299_vm0, %v535_v28 }
  0x9e   : > { %v2901_v58 = vpop.f32.mrf.mxu1 }
  0xa0   : > { %2268 = vmatmul.msk.f32.gmra.mxu2 %vm299_vm0, %v535_v28 }
  0xa1   : > { %2278 = vmatmul.msk.f32.gmra.mxu3 %vm299_vm0, %v637_v29 }
  0xa2   : > { %2288 = vmatmul.msk.f32.gmra.mxu0 %vm299_vm0, %v739_v30 }
  0xa3   : > { %2298 = vmatmul.msk.f32.gmra.mxu1 %vm299_vm0, %v841_v31 }
  0xa8   : > { %2301 = vmatmul.msk.f32.vlgmr.msra.gmra.mxu2 %vm299_vm0, %v2766_v6  ;;  %v1391_v6 = vld [vmem:[#allocation5 + $0xd0] sm:$0xff] }
  0xa9   : > { %2311 = vmatmul.msk.f32.vlgmr.msra.gmra.mxu3 %vm299_vm0, %v2768_v7 }
  0xaa   : > { %2321 = vmatmul.msk.f32.vlgmr.msra.gmra.mxu0 %vm299_vm0, %v530_v16 }
  0xb0   : > { %2302 = vmatmul.msk.f32.gmra.mxu2 %vm299_vm0, %v339_v10  ;;  %v1390_v10 = vld [vmem:[#allocation5 + $0xc8] sm:$0xff] }
  0xb1   : > { %2312 = vmatmul.msk.f32.gmra.mxu3 %vm299_vm0, %v429_v11 }
  0xb2   : > { %2322 = vmatmul.msk.f32.gmra.mxu0 %vm299_vm0, %v531_v23  ;;  %v1575_v23 = vld [vmem:[#allocation5 + $0x1f0] sm:$0xff] }
  0xb3   : > { %1578 = vmatpush.msrb.mxu0 %v1575_v23  ;;  %v1303_v23 = vld [vmem:[#allocation5] sm:$0xff] }
  0xb8   : > { %2303 = vmatmul.msk.f32.gmra.mxu2 %vm299_vm0, %v2654_v12  ;;  %v2859_v12 = vpop.f32.mrf.mxu2 }
  0xb9   : > { %2313 = vmatmul.msk.f32.gmra.mxu3 %vm299_vm0, %v2658_v13  ;;  %v2861_v13 = vpop.f32.mrf.mxu3 }
  0xba   : > { %2323 = vmatmul.msk.f32.gmra.mxu0 %vm299_vm0, %v532_v25 }
  0xc0   : > { %2304 = vmatmul.msk.f32.gmra.mxu2 %vm299_vm0, %v2744_v61  ;;  %v1486_v61 = vld [vmem:[#allocation5 + $0x178] sm:$0xff] }
  0xc1   : > { %2314 = vmatmul.msk.f32.gmra.mxu3 %vm299_vm0, %v2746_v62  ;;  %v1393_v62 = vld [vmem:[#allocation5 + $0xe0] sm:$0xff] }
  0xc2   : > { %2324 = vmatmul.msk.f32.gmra.mxu0 %vm299_vm0, %v533_v26  ;;  %1487 = vmatpush.msrb.mxu3 %v1486_v61  ;;  %v1307_v26 = vld [vmem:[#allocation5 + $0x20] sm:$0xff]  ;;  %v1570_v61 = vld [vmem:[#allocation5 + $0x1c8] sm:$0xff] }
  0xc3   : > { %1400 = vmatpush.msrb.mxu2 %v1393_v62  ;;  %v1382_v62 = vld [vmem:[#allocation5 + $0x88] sm:$0xff] }
  0xc4   : > { %1488 = vmatpush.msrb.mxu3 %v1485_v3  ;;  %v1569_v3 = vld [vmem:[#allocation5 + $0x1c0] sm:$0xff] }
  0xc5   : > { %v2853_v32 = vpop.f32.mrf.mxu0 }
  0xc8   : > { %2305 = vmatmul.msk.f32.gmra.mxu2 %vm299_vm0, %v2762_v4  ;;  %v1392_v4 = vld [vmem:[#allocation5 + $0xd8] sm:$0xff] }
  0xc9   : > { %2315 = vmatmul.msk.f32.gmra.mxu3 %vm299_vm0, %v2764_v5  ;;  %v1484_v5 = vld [vmem:[#allocation5 + $0x168] sm:$0xff]  ;;  %1401 = vmatpush.msrb.mxu2 %v1392_v4  ;;  %v1381_v4 = vld [vmem:[#allocation5 + $0x80] sm:$0xff] }
  0xca   : > { %2325 = vmatmul.msk.f32.gmra.mxu0 %vm299_vm0, %v534_v27  ;;  %1489 = vmatpush.msrb.mxu3 %v1484_v5  ;;  %v1479_v27 = vld [vmem:[#allocation5 + $0x140] sm:$0xff] }
  0xcb   : > { %1402 = vmatpush.msrb.mxu2 %v1391_v6 }
  0xcd   : > { %1403 = vmatpush.msrb.mxu2 %v1390_v10  ;;  %v1568_v10 = vld [vmem:[#allocation5 + $0x1b8] sm:$0xff] }
  0xcf   : > { %v2864_v33 = vpop.f32.mrf.mxu0  ;;  %1404 = vmatpush.msrb.mxu2 %v1389_v15  ;;  %v1472_v15 = vld [vmem:[#allocation5 + $0x108] sm:$0xff] }
  0xd0   : > { %2306 = vmatmul.msk.f32.gmra.mxu2 %vm299_vm0, %v2778_v8  ;;  %v1309_v8 = vld [vmem:[#allocation5 + $0x30] sm:$0xff]  ;;  %v2909_v11 = vpop.f32.mrf.mxu1 }
  0xd1   : > { %2316 = vmatmul.msk.f32.gmra.mxu3 %vm299_vm0, %v2780_v9  ;;  %v1483_v9 = vld [vmem:[#allocation5 + $0x160] sm:$0xff]  ;;  %1332 = vmatpush.msra.mxu1 %v1309_v8  ;;  %v1304_v8 = vld [vmem:[#allocation5 + $0x8] sm:$0xff] }
  0xd2   : > { %2326 = vmatmul.msk.f32.gmra.mxu0 %vm299_vm0, %v535_v28  ;;  %1490 = vmatpush.msrb.mxu3 %v1483_v9  ;;  %v1574_v28 = vld [vmem:[#allocation5 + $0x1e8] sm:$0xff]  ;;  %v1473_v9 = vld [vmem:[#allocation5 + $0x110] sm:$0xff] }
  0xd3   : > { %v2871_v34 = vpop.f32.mrf.mxu2  ;;  %1333 = vmatpush.msra.mxu1 %v1308_v18  ;;  %1405 = vmatpush.msrb.mxu2 %v1388_v21  ;;  %v1567_v18 = vld [vmem:[#allocation5 + $0x1b0] sm:$0xff]  ;;  %v1566_v21 = vld [vmem:[#allocation5 + $0x1a8] sm:$0xff] }
  0xd4   : > { %v2873_v35 = vpop.f32.mrf.mxu3  ;;  %1491 = vmatpush.msrb.mxu3 %v1482_v14  ;;  %1579 = vmatpush.msrb.mxu0 %v1574_v28  ;;  %v1295_v28 = vld [vmem:[#allocation3 + $0x7] sm:$0xff] }
  0xd5   : > { %1406 = vmatpush.msrb.mxu2 %v1387_v24  ;;  %1334 = vmatpush.msra.mxu1 %v1307_v26  ;;  %v1565_v24 = vld [vmem:[#allocation5 + $0x1a0] sm:$0xff] }
  0xd6   : > { %1492 = vmatpush.msrb.mxu3 %v1481_v19 }
  0xd7   : > { %v2875_v37 = vpop.f32.mrf.mxu0 }
  0xd8   : > { %2307 = vmatmul.msk.f32.gmra.mxu2 %vm299_vm0, %v637_v29  ;;  %1493 = vmatpush.msrb.mxu3 %v1480_v22  ;;  %v1386_v29 = vld [vmem:[#allocation5 + $0xa8] sm:$0xff]  ;;  %v1462_v22 = vld [vmem:[#allocation3 + $0x9] sm:$0xff] }
  0xd9   : > { %2317 = vmatmul.msk.f32.gmra.mxu3 %vm299_vm0, %v739_v30  ;;  %v1478_v30 = vld [vmem:[#allocation5 + $0x138] sm:$0xff]  ;;  %1407 = vmatpush.msrb.mxu2 %v1386_v29 }
  0xda   : > { %2327 = vmatmul.msk.f32.gmra.mxu0 %vm299_vm0, %v841_v31  ;;  %1494 = vmatpush.msrb.mxu3 %v1479_v27  ;;  %v1573_v31 = vld [vmem:[#allocation5 + $0x1e0] sm:$0xff]  ;;  %v1564_v29 = vld [vmem:[#allocation5 + $0x198] sm:$0xff] }
  0xdb   : > { %v2880_v39 = vpop.f32.mrf.mxu2  ;;  %1580 = vmatpush.msrb.mxu0 %v1573_v31  ;;  %1408 = vmatpush.msrb.mxu2 %v1385_v36  ;;  %v1563_v31 = vld [vmem:[#allocation5 + $0x190] sm:$0xff] }
  0xdc   : > { %v2882_v40 = vpop.f32.mrf.mxu3  ;;  %1495 = vmatpush.msrb.mxu3 %v1478_v30  ;;  %v2941_v30 = vld [vmem:[%s3234_s2] ss:$0 sm:$0xff] }
  0xdd   : > { %1581 = vmatpush.msrb.mxu0 %v1572_v46  ;;  %1409 = vmatpush.msrb.mxu2 %v1384_v49  ;;  %v1562_v46 = vld [vmem:[#allocation5 + $0x188] sm:$0xff]  ;;  %v1561_v49 = vld [vmem:[#allocation5 + $0x180] sm:$0xff] }
  0xdf   : > { %v2884_v44 = vpop.f32.mrf.mxu0  ;;  %1582 = vmatpush.msrb.mxu0 %v1571_v54  ;;  %1410 = vmatpush.msrb.mxu2 %v1383_v55 }
  0xe0   : > { %2308 = vmatmul.msk.f32.gmra.mxu2 %vm299_vm0, %v944_v42  ;;  %v2921_v42 = vpop.f32.mrf.mxu1 }
  0xe1   : > { %2318 = vmatmul.msk.f32.gmra.mxu3 %vm299_vm0, %v1046_v43  ;;  %v1306_v43 = vld [vmem:[#allocation5 + $0x18] sm:$0xff]  ;;  %1583 = vmatpush.msrb.mxu0 %v1570_v61 }
  0xe2   : > { %2328 = vmatmul.msk.f32.gmra.mxu0 %vm299_vm0, %v1148_v45  ;;  %v1477_v45 = vld [vmem:[#allocation5 + $0x130] sm:$0xff]  ;;  %1335 = vmatpush.msra.mxu1 %v1306_v43  ;;  %v395_v43 = vadd.f32 %v2941_v30, %v2853_v32  ;;  %v398_v32 = vadd.f32 %v2941_v30, %v2864_v33  ;;  %v401_v33 = vadd.f32 %v2941_v30, %v2875_v37 }
  0xe3   : > { %v2889_v47 = vpop.f32.mrf.mxu2  ;;  %1496 = vmatpush.msrb.mxu3 %v1477_v45  ;;  %1411 = vmatpush.msrb.mxu2 %v1382_v62 }
  0xe4   : > { %v2891_v48 = vpop.f32.mrf.mxu3  ;;  %1336 = vmatpush.msra.mxu1 %v1305_v59  ;;  %1584 = vmatpush.msrb.mxu0 %v1569_v3  ;;  %v512_v55 = vadd.f32 %v2901_v58, %v395_v43  ;;  %v1665_v59 = vld [vmem:[#allocation5 + $0x270] sm:$0xff]  ;;  %v513_v58 = vadd.f32 %v2909_v11, %v398_v32  ;;  %v1658_v32 = vld [vmem:[#allocation5 + $0x238] sm:$0xff] }
  0xe5   : > { %1497 = vmatpush.msrb.mxu3 %v1476_v51  ;;  %1412 = vmatpush.msrb.mxu2 %v1381_v4  ;;  %v1755_v43 = vld [vmem:[#allocation5 + $0x2f0] sm:$0xff] }
  0xe6   : > { %1337 = vmatpush.msra.mxu1 %v1304_v8  ;;  %1585 = vmatpush.msrb.mxu0 %v1568_v10  ;;  %v1662_v10 = vld [vmem:[#allocation5 + $0x258] sm:$0xff] }
  0xe7   : > { %v2893_v50 = vpop.f32.mrf.mxu0  ;;  %1498 = vmatpush.msrb.mxu3 %v1475_v60  ;;  %v1664_v60 = vld [vmem:[#allocation5 + $0x268] sm:$0xff] }
  0xe8   : > { %v2929_v14 = vpop.f32.mrf.mxu1  ;;  %1413 = vmatmul.f32.vlgmr.msrb.gmra.mxu2 %v2497_v0  ;;  %1586 = vmatpush.msrb.mxu0 %v1567_v18  ;;  %v1666_v0 = vld [vmem:[#allocation5 + $0x278] sm:$0xff] }
  0xe9   : > { %1499 = vmatpush.msrb.mxu3 %v1474_v2  ;;  %1338 = vmatpush.msra.mxu1 %v1303_v23  ;;  %v514_v23 = vadd.f32 %v2921_v42, %v401_v33  ;;  %v1754_v42 = vld [vmem:[#allocation5 + $0x2e8] sm:$0xff] }
  0xea   : > { %1587 = vmatpush.msrb.mxu0 %v1566_v21  ;;  %1339 = vmatmul.f32.vlgmr.msra.gmra.mxu1 %v1295_v28  ;;  %v1661_v28 = vld [vmem:[#allocation5 + $0x250] sm:$0xff] }
  0xeb   : > { %v2895_v52 = vpop.f32.mrf.mxu2  ;;  %1500 = vmatpush.msrb.mxu3 %v1473_v9  ;;  %1667 = vmatpush.msrb.mxu1 %v1666_v0  ;;  %v1663_v9 = vld [vmem:[#allocation5 + $0x260] sm:$0xff]  ;;  %v1660_v0 = vld [vmem:[#allocation5 + $0x248] sm:$0xff] }
  0xec   : > { %v2897_v53 = vpop.f32.mrf.mxu3  ;;  %1588 = vmatpush.msrb.mxu0 %v1565_v24  ;;  %v614_v61 = vadd.f32 %v2895_v52, %v512_v55 }
  0xed   : > { %1501 = vmatpush.msrb.mxu3 %v1472_v15  ;;  %1668 = vmatpush.msrb.mxu1 %v1665_v59 }
  0xee   : > { %1589 = vmatpush.msrb.mxu0 %v1564_v29  ;;  %v716_v2 = vadd.f32 %v2897_v53, %v614_v61 }
  0xef   : > { %v2899_v57 = vpop.f32.mrf.mxu0  ;;  %1502 = vmatpush.msrb.mxu3 %v1471_v20  ;;  %1669 = vmatpush.msrb.mxu1 %v1664_v60 }
  0xf0   : > { %1503 = vmatmul.f32.vlgmr.msrb.gmra.mxu3 %v1462_v22  ;;  %v888_v45 = vpop.f32.mrf.mxu1  ;;  %1590 = vmatpush.msrb.mxu0 %v1563_v31  ;;  %v818_v52 = vadd.f32 %v2893_v50, %v716_v2  ;;  %v1756_v50 = vld [vmem:[#allocation5 + $0x2f8] sm:$0xff] }
  0xf1   : > { %1670 = vmatpush.msrb.mxu1 %v1663_v9  ;;  %1757 = vmatpush.msra.mxu2 %v1756_v50  ;;  %v1847_v2 = vld [vmem:[#allocation5 + $0x378] sm:$0xff] }
  0xf2   : > { %1591 = vmatpush.msrb.mxu0 %v1562_v46  ;;  %v920_v53 = vadd.f32 %v888_v45, %v818_v52  ;;  %1848 = vmatpush.msra.mxu3 %v1847_v2 }
  0xf3   : > { %v2903_v63 = vpop.f32.mrf.mxu2  ;;  %1671 = vmatpush.msrb.mxu1 %v1662_v10  ;;  %1758 = vmatpush.msra.mxu2 %v1755_v43 }
  0xf4   : > { %v2905_v1 = vpop.f32.mrf.mxu3  ;;  %1592 = vmatpush.msrb.mxu0 %v1561_v49  ;;  %v615_v15 = vadd.f32 %v2903_v63, %v513_v58 }
  0xf5   : > { %1672 = vmatpush.msrb.mxu1 %v1661_v28  ;;  %1759 = vmatpush.msra.mxu2 %v1754_v42  ;;  %v1842_v42 = vld [vmem:[#allocation5 + $0x350] sm:$0xff] }
  0xf6   : > { %v717_v20 = vadd.f32 %v2905_v1, %v615_v15  ;;  %v404_v1 = vadd.f32 %v2941_v30, %v2884_v44  ;;  %v1659_v44 = vld [vmem:[#allocation5 + $0x240] sm:$0xff]  ;;  %v1751_v15 = vld [vmem:[#allocation5 + $0x2d0] sm:$0xff] }
  0xf7   : > { %v2907_v7 = vpop.f32.mrf.mxu0  ;;  %1673 = vmatpush.msrb.mxu1 %v1660_v0  ;;  %v1844_v0 = vld [vmem:[#allocation5 + $0x360] sm:$0xff] }
  0xf8   : > { %v891_v3 = vpop.f32.mrf.mxu1  ;;  %v819_v63 = vadd.f32 %v2899_v57, %v717_v20  ;;  %v515_v60 = vadd.f32 %v2929_v14, %v404_v1  ;;  %v1846_v14 = vld [vmem:[#allocation5 + $0x370] sm:$0xff]  ;;  %v1750_v20 = vld [vmem:[#allocation5 + $0x2c8] sm:$0xff] }
  0xf9   : > { %1674 = vmatpush.msrb.mxu1 %v1659_v44  ;;  %1849 = vmatpush.msra.mxu3 %v1846_v14  ;;  %v1654_v14 = vld [vmem:[#allocation5 + $0x218] sm:$0xff] }
  0xfa   : > { %v921_v46 = vadd.f32 %v891_v3, %v819_v63  ;;  %v1752_v3 = vld [vmem:[#allocation5 + $0x2d8] sm:$0xff]  ;;  %v1656_v63 = vld [vmem:[#allocation5 + $0x228] sm:$0xff] }
  0xfb   : > { %v2911_v16 = vpop.f32.mrf.mxu2  ;;  %1675 = vmatpush.msrb.mxu1 %v1658_v32 }
  0xfc   : > { %v2913_v17 = vpop.f32.mrf.mxu3  ;;  %v616_v29 = vadd.f32 %v2911_v16, %v514_v23  ;;  %v1753_v16 = vld [vmem:[#allocation5 + $0x2e0] sm:$0xff] }
  0xfd   : > { %1760 = vmatpush.msra.mxu2 %v1753_v16  ;;  %v1747_v16 = vld [vmem:[#allocation5 + $0x2b0] sm:$0xff] }
  0xfe   : > { %v718_v49 = vadd.f32 %v2913_v17, %v616_v29  ;;  %v1843_v29 = vld [vmem:[#allocation5 + $0x358] sm:$0xff] }
  0xff   : > { %v2915_v25 = vpop.f32.mrf.mxu0  ;;  %1761 = vmatpush.msra.mxu2 %v1752_v3  ;;  %v1841_v3 = vld [vmem:[#allocation5 + $0x348] sm:$0xff] }
 0x100   : > { %v894_v11 = vpop.f32.mrf.mxu1  ;;  %v820_v17 = vadd.f32 %v2907_v7, %v718_v49  ;;  %v410_v49 = vadd.f32 %v2941_v30, %v2871_v34 }
 0x101   : > { %1762 = vmatpush.msra.mxu2 %v1751_v15 }
 0x103   : > { %v2917_v38 = vpop.f32.mrf.mxu2  ;;  %1763 = vmatpush.msra.mxu2 %v1750_v20 }
 0x104   : > { %v2919_v41 = vpop.f32.mrf.mxu3  ;;  %v617_v58 = vadd.f32 %v2917_v38, %v515_v60 }
 0x106   : > { %v719_v7 = vadd.f32 %v2919_v41, %v617_v58  ;;  %v1749_v41 = vld [vmem:[#allocation5 + $0x2c0] sm:$0xff] }
 0x107   : > { %v2923_v56 = vpop.f32.mrf.mxu0  ;;  %1764 = vmatpush.msra.mxu2 %v1749_v41 }
 0x108   : > { %v897_v9 = vpop.f32.mrf.mxu1 }
 0x10b   : > { %v2925_v5 = vpop.f32.mrf.mxu2 }
 0x10c   : > { %v2927_v6 = vpop.f32.mrf.mxu3 }
 0x10f   : > { %v2932_v19 = vpop.f32.mrf.mxu0 }
 0x113   : > { %v2934_v26 = vpop.f32.mrf.mxu2 }
 0x114   : > { %v2936_v27 = vpop.f32.mrf.mxu3 }
 0x117   : > { %v2943_v36 = vpop.f32.mrf.mxu0 }
 0x11b   : > { %v2947_v51 = vpop.f32.mrf.mxu2 }
 0x11c   : > { %v2949_v54 = vpop.f32.mrf.mxu3 }
 0x11f   : > { %v2953_v62 = vpop.f32.mrf.mxu0 }
 0x123   : > { %v2958_v4 = vpop.f32.mrf.mxu2 }
 0x124   : > { %v2960_v8 = vpop.f32.mrf.mxu3 }
 0x127   : > { %v1195_v18 = vpop.f32.mrf.mxu0 }
 0x12b   : > { %v991_v21 = vpop.f32.mrf.mxu2 }
 0x12c   : > { %v1093_v22 = vpop.f32.mrf.mxu3  ;;  %v1023_v24 = vadd.f32 %v991_v21, %v920_v53  ;;  %v1845_v53 = vld [vmem:[#allocation5 + $0x368] sm:$0xff]  ;;  %v922_v21 = vadd.f32 %v894_v11, %v820_v17  ;;  %v1657_v11 = vld [vmem:[#allocation5 + $0x230] sm:$0xff]  ;;  %v517_v17 = vadd.f32 %v2873_v35, %v410_v49 }
 0x12d   : > { %1850 = vmatpush.msra.mxu3 %v1845_v53  ;;  %1676 = vmatpush.msrb.mxu1 %v1657_v11  ;;  %v1745_v53 = vld [vmem:[#allocation5 + $0x2a0] sm:$0xff]  ;;  %v1742_v49 = vld [vmem:[#allocation5 + $0x288] sm:$0xff] }
 0x12e   : > { %v1125_v31 = vadd.f32 %v1093_v22, %v1023_v24  ;;  %v619_v35 = vadd.f32 %v2934_v26, %v517_v17 }
 0x12f   : > { %v1198_v37 = vpop.f32.mrf.mxu0  ;;  %1851 = vmatpush.msra.mxu3 %v1844_v0  ;;  %1677 = vmatpush.msrb.mxu1 %v1656_v63  ;;  %v1838_v63 = vld [vmem:[#allocation5 + $0x330] sm:$0xff] }
 0x130   : > { %v1227_v45 = vadd.f32 %v1195_v18, %v1125_v31  ;;  %v407_v18 = vadd.f32 %v2941_v30, %v2859_v12  ;;  %v1937_v31 = vld [vmem:[#allocation5 + $0x3f8] sm:$0xff]  ;;  %v721_v26 = vadd.f32 %v2936_v27, %v619_v35  ;;  %v1653_v27 = vld [vmem:[#allocation5 + $0x210] sm:$0xff] }
 0x131   : > { %1938 = vmatpush.msra.mxu0 %v1937_v31  ;;  %1852 = vmatpush.msra.mxu3 %v1843_v29 }
 0x132   : > { %v2974_v55 = vmax.f32 %v1227_v45, 0.0  ;;  %v516_v12 = vadd.f32 %v2861_v13, %v407_v18  ;;  %v1748_v13 = vld [vmem:[#allocation5 + $0x2b8] sm:$0xff] }
 0x133   : > { %v994_v57 = vpop.f32.mrf.mxu2  ;;  %1765 = vmatpush.msra.mxu2 %v1748_v13  ;;  %1853 = vmatpush.msra.mxu3 %v1842_v42  ;;  %v1652_v13 = vld [vmem:[#allocation5 + $0x208] sm:$0xff] }
 0x134   : > { %v1096_v59 = vpop.f32.mrf.mxu3  ;;  %1287 = vst [vmem:[#allocation3 + $0x20] sm:$0xff] %v2974_v55  ;;  %v1024_v61 = vadd.f32 %v994_v57, %v921_v46  ;;  %1416 = vmatmul.f32.gmra.mxu2 %v2974_v55  ;;  %v618_v43 = vadd.f32 %v2925_v5, %v516_v12  ;;  %v1936_v46 = vld [vmem:[#allocation5 + $0x3f0] sm:$0xff]  ;;  %v900_v57 = vpop.f32.mrf.mxu1 }
 0x135   : > { %1939 = vmatpush.msra.mxu0 %v1936_v46  ;;  %1766 = vmatpush.msra.mxu2 %v1747_v16  ;;  %v1930_v46 = vld [vmem:[#allocation5 + $0x3c0] sm:$0xff]  ;;  %v416_v16 = vadd.f32 %v2941_v30, %v2889_v47 }
 0x136   : > { %v1126_v10 = vadd.f32 %v1096_v59, %v1024_v61  ;;  %v720_v60 = vadd.f32 %v2927_v6, %v618_v43  ;;  %v1655_v6 = vld [vmem:[#allocation5 + $0x220] sm:$0xff]  ;;  %1854 = vmatpush.msra.mxu3 %v1841_v3  ;;  %v1743_v43 = vld [vmem:[#allocation5 + $0x290] sm:$0xff]  ;;  %v1835_v3 = vld [vmem:[#allocation5 + $0x318] sm:$0xff] }
 0x137   : > { %v1201_v52 = vpop.f32.mrf.mxu0  ;;  %1678 = vmatpush.msrb.mxu1 %v1655_v6  ;;  %v1928_v6 = vld [vmem:[#allocation5 + $0x3b0] sm:$0xff] }
 0x138   : > { %v1228_v33 = vadd.f32 %v1198_v37, %v1126_v10  ;;  %v821_v37 = vadd.f32 %v2915_v25, %v719_v7  ;;  %v1935_v25 = vld [vmem:[#allocation5 + $0x3e8] sm:$0xff]  ;;  %v822_v15 = vadd.f32 %v2923_v56, %v720_v60  ;;  %v413_v7 = vadd.f32 %v2941_v30, %v2880_v39  ;;  %v1929_v60 = vld [vmem:[#allocation5 + $0x3b8] sm:$0xff] }
 0x139   : > { %1940 = vmatpush.msra.mxu0 %v1935_v25  ;;  %v1746_v10 = vld [vmem:[#allocation5 + $0x2a8] sm:$0xff]  ;;  %1679 = vmatpush.msrb.mxu1 %v1654_v14 }
 0x13a   : > { %v2984_v38 = vmax.f32 %v1228_v33, 0.0  ;;  %v923_v5 = vadd.f32 %v897_v9, %v821_v37  ;;  %v1934_v9 = vld [vmem:[#allocation5 + $0x3e0] sm:$0xff]  ;;  %v1933_v33 = vld [vmem:[#allocation5 + $0x3d8] sm:$0xff]  ;;  %1767 = vmatpush.msra.mxu2 %v1746_v10  ;;  %v924_v56 = vadd.f32 %v900_v57, %v822_v15  ;;  %v518_v29 = vadd.f32 %v2882_v40, %v413_v7  ;;  %v1931_v37 = vld [vmem:[#allocation5 + $0x3c8] sm:$0xff] }
 0x13b   : > { %v997_v22 = vpop.f32.mrf.mxu2  ;;  %v1296_v23 = vld [vmem:[#allocation3 + $0x1f] sm:$0xff]  ;;  %1941 = vmatpush.msra.mxu0 %v1934_v9  ;;  %1680 = vmatpush.msrb.mxu1 %v1653_v27  ;;  %v1836_v57 = vld [vmem:[#allocation5 + $0x320] sm:$0xff]  ;;  %v519_v9 = vadd.f32 %v2891_v48, %v416_v16  ;;  %v2027_v15 = vld [vmem:[#allocation5 + $0x478] sm:$0xff] }
 0x13c   : > { %v2986_v24 = vld [vmem:[#allocation3 + $0x21] sm:$0xff]  ;;  %v1099_v28 = vpop.f32.mrf.mxu3  ;;  %1288 = vst [vmem:[#allocation3 + $0x38] sm:$0xff] %v2984_v38  ;;  %v1025_v50 = vadd.f32 %v997_v22, %v922_v21  ;;  %1342 = vmatmul.f32.gmra.mxu1 %v1296_v23  ;;  %1593 = vmatmul.f32.vlgmr.msrb.gmra.mxu0 %v1296_v23  ;;  %v903_v0 = vpop.f32.mrf.mxu1  ;;  %v620_v40 = vadd.f32 %v2947_v51, %v518_v29  ;;  %v1927_v14 = vld [vmem:[#allocation5 + $0x3a8] sm:$0xff]  ;;  %v2024_v27 = vld [vmem:[#allocation5 + $0x460] sm:$0xff] }
 0x13d   : > { %1506 = vmatmul.f32.gmra.mxu3 %v2986_v24  ;;  %1419 = vmatmul.f32.gmra.mxu2 %v2984_v38  ;;  %v1839_v21 = vld [vmem:[#allocation5 + $0x338] sm:$0xff]  ;;  %v1932_v23 = vld [vmem:[#allocation5 + $0x3d0] sm:$0xff] }
 0x13e   : > { %v1127_v1 = vadd.f32 %v1099_v28, %v1025_v50  ;;  %v1744_v28 = vld [vmem:[#allocation5 + $0x298] sm:$0xff]  ;;  %1942 = vmatpush.msra.mxu0 %v1933_v33  ;;  %1768 = vmatpush.msra.mxu2 %v1745_v53  ;;  %v2026_v33 = vld [vmem:[#allocation5 + $0x470] sm:$0xff]  ;;  %v1833_v53 = vld [vmem:[#allocation5 + $0x308] sm:$0xff] }
 0x13f   : > { %v1204_v45 = vpop.f32.mrf.mxu0  ;;  %1681 = vmatpush.msrb.mxu1 %v1652_v13  ;;  %v2023_v16 = vld [vmem:[#allocation5 + $0x458] sm:$0xff] }
 0x140   : > { %v1229_v59 = vadd.f32 %v1201_v52, %v1127_v1  ;;  %v1840_v52 = vld [vmem:[#allocation5 + $0x340] sm:$0xff]  ;;  %1943 = vmatpush.msra.mxu0 %v1932_v23  ;;  %1769 = vmatpush.msra.mxu2 %v1744_v28  ;;  %v1837_v1 = vld [vmem:[#allocation5 + $0x328] sm:$0xff] }
 0x141   : > { %1855 = vmatpush.msra.mxu3 %v1840_v52  ;;  %v1834_v52 = vld [vmem:[#allocation5 + $0x310] sm:$0xff] }
 0x142   : > { %v2997_v61 = vmax.f32 %v1229_v59, 0.0  ;;  %1944 = vmatpush.msra.mxu0 %v1931_v37  ;;  %1770 = vmatpush.msra.mxu2 %v1743_v43  ;;  %v1651_v59 = vld [vmem:[#allocation5 + $0x200] sm:$0xff]  ;;  %v1923_v43 = vld [vmem:[#allocation5 + $0x388] sm:$0xff] }
 0x143   : > { %v1000_v44 = vpop.f32.mrf.mxu2  ;;  %v2999_v32 = vld [vmem:[#allocation3 + $0x37] sm:$0xff]  ;;  %1856 = vmatpush.msra.mxu3 %v1839_v21  ;;  %1682 = vmatpush.msrb.mxu1 %v1651_v59 }
 0x144   : > { %v3001_v2 = vld [vmem:[#allocation3 + $0x39] sm:$0xff]  ;;  %v1102_v34 = vpop.f32.mrf.mxu3  ;;  %1289 = vst [vmem:[#allocation3 + $0x50] sm:$0xff] %v2997_v61  ;;  %v1026_v58 = vadd.f32 %v1000_v44, %v923_v5  ;;  %1345 = vmatmul.f32.gmra.mxu1 %v2999_v32  ;;  %1596 = vmatmul.f32.gmra.mxu0 %v2999_v32  ;;  %v722_v44 = vadd.f32 %v2949_v54, %v620_v40  ;;  %v906_v54 = vpop.f32.mrf.mxu1 }
 0x145   : > { %1509 = vmatmul.f32.gmra.mxu3 %v3001_v2  ;;  %1422 = vmatmul.f32.gmra.mxu2 %v2997_v61 }
 0x146   : > { %v1128_v18 = vadd.f32 %v1102_v34, %v1026_v58  ;;  %1857 = vmatpush.msra.mxu3 %v1838_v63  ;;  %1945 = vmatpush.msra.mxu0 %v1930_v46  ;;  %v824_v35 = vadd.f32 %v2943_v36, %v722_v44  ;;  %v1832_v36 = vld [vmem:[#allocation5 + $0x300] sm:$0xff]  ;;  %v2025_v63 = vld [vmem:[#allocation5 + $0x468] sm:$0xff] }
 0x147   : > { %v1207_v20 = vpop.f32.mrf.mxu0  ;;  %1771 = vmatpush.msra.mxu2 %v1742_v49  ;;  %2028 = vmatpush.msra.mxu1 %v2027_v15  ;;  %v1922_v49 = vld [vmem:[#allocation5 + $0x380] sm:$0xff] }
 0x148   : > { %v1230_v22 = vadd.f32 %v1204_v45, %v1128_v18  ;;  %v823_v45 = vadd.f32 %v2932_v19, %v721_v26  ;;  %1858 = vmatpush.msra.mxu3 %v1837_v1  ;;  %v1741_v19 = vld [vmem:[#allocation5 + $0x280] sm:$0xff]  ;;  %1946 = vmatpush.msra.mxu0 %v1929_v60  ;;  %v621_v18 = vadd.f32 %v2958_v4, %v519_v9  ;;  %v2018_v9 = vld [vmem:[#allocation5 + $0x430] sm:$0xff] }
 0x149   : > { %1772 = vmatpush.msra.mxu2 %v1741_v19  ;;  %2029 = vmatpush.msra.mxu1 %v2026_v33  ;;  %v926_v7 = vadd.f32 %v906_v54, %v824_v35 }
 0x14a   : > { %v3014_v12 = vmax.f32 %v1230_v22, 0.0  ;;  %v925_v51 = vadd.f32 %v903_v0, %v823_v45  ;;  %1859 = vmatpush.msra.mxu3 %v1836_v57  ;;  %1947 = vmatpush.msra.mxu0 %v1928_v6  ;;  %v723_v22 = vadd.f32 %v2960_v8, %v621_v18  ;;  %v1924_v8 = vld [vmem:[#allocation5 + $0x390] sm:$0xff]  ;;  %v2019_v6 = vld [vmem:[#allocation5 + $0x438] sm:$0xff] }
 0x14b   : > { %v1003_v50 = vpop.f32.mrf.mxu2  ;;  %v3016_v11 = vld [vmem:[#allocation3 + $0x4f] sm:$0xff]  ;;  %2030 = vmatpush.msra.mxu1 %v2025_v63 }
 0x14c   : > { %v3018_v41 = vld [vmem:[#allocation3 + $0x51] sm:$0xff]  ;;  %v1105_v39 = vpop.f32.mrf.mxu3  ;;  %1290 = vst [vmem:[#allocation3 + $0x68] sm:$0xff] %v3014_v12  ;;  %v1027_v31 = vadd.f32 %v1003_v50, %v924_v56  ;;  %1348 = vmatmul.f32.gmra.mxu1 %v3016_v11  ;;  %1599 = vmatmul.f32.gmra.mxu0 %v3016_v11  ;;  %v1925_v50 = vld [vmem:[#allocation5 + $0x398] sm:$0xff]  ;;  %v825_v29 = vadd.f32 %v2953_v62, %v723_v22  ;;  %v909_v37 = vpop.f32.mrf.mxu1 }
 0x14d   : > { %1512 = vmatmul.f32.gmra.mxu3 %v3018_v41  ;;  %1425 = vmatmul.f32.gmra.mxu2 %v3014_v12 }
 0x14e   : > { %v1129_v42 = vadd.f32 %v1105_v39, %v1027_v31  ;;  %1860 = vmatpush.msra.mxu3 %v1835_v3  ;;  %1948 = vmatpush.msra.mxu0 %v1927_v14  ;;  %v927_v13 = vadd.f32 %v909_v37, %v825_v29  ;;  %v2021_v3 = vld [vmem:[#allocation5 + $0x448] sm:$0xff] }
 0x14f   : > { %v1210_v5 = vpop.f32.mrf.mxu0  ;;  %2031 = vmatpush.msra.mxu1 %v2024_v27 }
 0x150   : > { %v1231_v25 = vadd.f32 %v1207_v20, %v1129_v42  ;;  %v1926_v20 = vld [vmem:[#allocation5 + $0x3a0] sm:$0xff]  ;;  %1861 = vmatpush.msra.mxu3 %v1834_v52 }
 0x151   : > { %1949 = vmatpush.msra.mxu0 %v1926_v20  ;;  %2032 = vmatpush.msra.mxu1 %v2023_v16 }
 0x152   : > { %v3031_v34 = vmax.f32 %v1231_v25, 0.0  ;;  %1862 = vmatpush.msra.mxu3 %v1833_v53  ;;  %v2022_v25 = vld [vmem:[#allocation5 + $0x450] sm:$0xff] }
 0x153   : > { %v1006_v17 = vpop.f32.mrf.mxu2  ;;  %v3033_v58 = vld [vmem:[#allocation3 + $0x67] sm:$0xff]  ;;  %1950 = vmatpush.msra.mxu0 %v1925_v50  ;;  %2033 = vmatpush.msra.mxu1 %v2022_v25 }
 0x154   : > { %v3035_v47 = vld [vmem:[#allocation3 + $0x69] sm:$0xff]  ;;  %v1108_v30 = vpop.f32.mrf.mxu3  ;;  %1291 = vst [vmem:[#allocation3 + $0x80] sm:$0xff] %v3031_v34  ;;  %v1028_v10 = vadd.f32 %v1006_v17, %v925_v51  ;;  %1351 = vmatmul.f32.gmra.mxu1 %v3033_v58  ;;  %1602 = vmatmul.f32.gmra.mxu0 %v3033_v58 }
 0x155   : > { %1515 = vmatmul.f32.gmra.mxu3 %v3035_v47  ;;  %1428 = vmatmul.f32.gmra.mxu2 %v3031_v34  ;;  %v2020_v17 = vld [vmem:[#allocation5 + $0x440] sm:$0xff] }
 0x156   : > { %v1130_v48 = vadd.f32 %v1108_v30, %v1028_v10  ;;  %1863 = vmatpush.msra.mxu3 %v1832_v36  ;;  %1951 = vmatpush.msra.mxu0 %v1924_v8  ;;  %v2016_v10 = vld [vmem:[#allocation5 + $0x420] sm:$0xff]  ;;  %v2010_v36 = vld [vmem:[#allocation3 + $0xe1] sm:$0xff] }
 0x157   : > { %v1213_v28 = vpop.f32.mrf.mxu0  ;;  %2034 = vmatpush.msra.mxu1 %v2021_v3 }
 0x158   : > { %v1232_v21 = vadd.f32 %v1210_v5, %v1130_v48  ;;  %1952 = vmatpush.msra.mxu0 %v1923_v43 }
 0x159   : > { %2035 = vmatpush.msra.mxu1 %v2020_v17 }
 0x15a   : > { %v3046_v23 = vmax.f32 %v1232_v21, 0.0  ;;  %1953 = vmatpush.msra.mxu0 %v1922_v49 }
 0x15b   : > { %v1009_v4 = vpop.f32.mrf.mxu2  ;;  %v3048_v56 = vld [vmem:[#allocation3 + $0x7f] sm:$0xff]  ;;  %2036 = vmatpush.msra.mxu1 %v2019_v6 }
 0x15c   : > { %v3050_v26 = vld [vmem:[#allocation3 + $0x81] sm:$0xff]  ;;  %v1111_v0 = vpop.f32.mrf.mxu3  ;;  %1292 = vst [vmem:[#allocation3 + $0x98] sm:$0xff] %v3046_v23  ;;  %v1029_v39 = vadd.f32 %v1009_v4, %v926_v7  ;;  %1354 = vmatmul.f32.gmra.mxu1 %v3048_v56  ;;  %1605 = vmatmul.f32.gmra.mxu0 %v3048_v56 }
 0x15d   : > { %1518 = vmatmul.f32.gmra.mxu3 %v3050_v26  ;;  %1431 = vmatmul.f32.gmra.mxu2 %v3046_v23 }
 0x15e   : > { %v1131_v31 = vadd.f32 %v1111_v0, %v1029_v39  ;;  %2037 = vmatpush.msra.mxu1 %v2018_v9 }
 0x15f   : > { %v1216_v59 = vpop.f32.mrf.mxu0 }
 0x160   : > { %v1233_v1 = vadd.f32 %v1213_v28, %v1131_v31 }
 0x162   : > { %v3058_v45 = vmax.f32 %v1233_v1, 0.0 }
 0x163   : > { %v1012_v40 = vpop.f32.mrf.mxu2  ;;  %v3060_v42 = vld [vmem:[#allocation3 + $0x97] sm:$0xff] }
 0x164   : > { %v3062_v46 = vld [vmem:[#allocation3 + $0x99] sm:$0xff]  ;;  %v1114_v62 = vpop.f32.mrf.mxu3  ;;  %1293 = vst [vmem:[#allocation3 + $0xb0] sm:$0xff] %v3058_v45  ;;  %v1030_v57 = vadd.f32 %v1012_v40, %v927_v13  ;;  %1357 = vmatmul.f32.gmra.mxu1 %v3060_v42  ;;  %1608 = vmatmul.f32.gmra.mxu0 %v3060_v42 }
 0x165   : > { %1521 = vmatmul.f32.gmra.mxu3 %v3062_v46  ;;  %1434 = vmatmul.f32.gmra.mxu2 %v3058_v45 }
 0x166   : > { %v1132_v5 = vadd.f32 %v1114_v62, %v1030_v57 }
 0x168   : > { %v1234_v60 = vadd.f32 %v1216_v59, %v1132_v5 }
 0x16a   : > { %v1285_v19 = vmax.f32 %v1234_v60, 0.0 }
 0x16b   : > { %v1302_v51 = vld [vmem:[#allocation3 + $0xaf] sm:$0xff]  ;;  %v1414_v15 = vpop.f32.mrf.mxu2 }
 0x16c   : > { %v3069_v44 = vld [vmem:[#allocation3 + $0xb1] sm:$0xff]  ;;  %1294 = vst [vmem:[#allocation3 + $0xc8] sm:$0xff] %v1285_v19  ;;  %1360 = vmatmul.f32.gmra.mxu1 %v1302_v51  ;;  %1611 = vmatmul.f32.gmra.mxu0 %v1302_v51 }
 0x16d   : > { %1524 = vmatmul.f32.gmra.mxu3 %v3069_v44  ;;  %1773 = vmatmul.f32.vlgmr.msra.gmra.mxu2 %v2986_v24  ;;  %v2017_v24 = vld [vmem:[#allocation5 + $0x428] sm:$0xff] }
 0x16e   : > { %2038 = vmatpush.msra.mxu1 %v2017_v24 }
 0x170   : > { %2039 = vmatpush.msra.mxu1 %v2016_v10 }
 0x173   : > { %v1559_v30 = vld [vmem:[#allocation3 + $0xc7] sm:$0xff]  ;;  %v1504_v35 = vpop.f32.mrf.mxu3 }
 0x174   : > { %1683 = vmatmul.f32.vlgmr.msrb.gmra.mxu1 %v2974_v55  ;;  %1614 = vmatmul.f32.gmra.mxu0 %v1559_v30  ;;  %v2015_v55 = vld [vmem:[#allocation5 + $0x418] sm:$0xff] }
 0x175   : > { %1864 = vmatmul.f32.vlgmr.msra.gmra.mxu3 %v2999_v32  ;;  %1776 = vmatmul.f32.gmra.mxu2 %v3001_v2  ;;  %v2014_v32 = vld [vmem:[#allocation5 + $0x410] sm:$0xff] }
 0x176   : > { %2040 = vmatpush.msra.mxu1 %v2015_v55 }
 0x178   : > { %2041 = vmatpush.msra.mxu1 %v2014_v32 }
 0x17c   : > { %1686 = vmatmul.f32.gmra.mxu1 %v2984_v38  ;;  %1954 = vmatmul.f32.vlgmr.msra.gmra.mxu0 %v2984_v38  ;;  %v2013_v38 = vld [vmem:[#allocation5 + $0x408] sm:$0xff] }
 0x17d   : > { %1867 = vmatmul.f32.gmra.mxu3 %v3016_v11  ;;  %1779 = vmatmul.f32.gmra.mxu2 %v3018_v41  ;;  %v2012_v11 = vld [vmem:[#allocation5 + $0x400] sm:$0xff] }
 0x17e   : > { %2042 = vmatpush.msra.mxu1 %v2013_v38 }
 0x180   : > { %2043 = vmatpush.msra.mxu1 %v2012_v11 }
 0x184   : > { %1689 = vmatmul.f32.gmra.mxu1 %v2997_v61  ;;  %1957 = vmatmul.f32.gmra.mxu0 %v2997_v61  ;;  %v1739_v61 = vld [vmem:[#allocation3 + $0xc9] sm:$0xff] }
 0x185   : > { %1870 = vmatmul.f32.gmra.mxu3 %v3033_v58  ;;  %1782 = vmatmul.f32.gmra.mxu2 %v3035_v47  ;;  %v2395_v58 = vld [vmem:[#allocation3 + $0x8] sm:$0xff] }
 0x18c   : > { %1692 = vmatmul.f32.gmra.mxu1 %v3014_v12  ;;  %1960 = vmatmul.f32.gmra.mxu0 %v3014_v12  ;;  %v1830_v12 = vld [vmem:[#allocation3 + $0xdf] sm:$0xff] }
 0x18d   : > { %1873 = vmatmul.f32.gmra.mxu3 %v3048_v56  ;;  %1785 = vmatmul.f32.gmra.mxu2 %v3050_v26 }
 0x194   : > { %1695 = vmatmul.f32.gmra.mxu1 %v3031_v34  ;;  %1963 = vmatmul.f32.gmra.mxu0 %v3031_v34  ;;  %v1340_v34 = vpop.f32.mrf.mxu1 }
 0x195   : > { %1876 = vmatmul.f32.gmra.mxu3 %v3060_v42  ;;  %1788 = vmatmul.f32.gmra.mxu2 %v3062_v46 }
 0x19c   : > { %1698 = vmatmul.f32.gmra.mxu1 %v3046_v23  ;;  %1966 = vmatmul.f32.gmra.mxu0 %v3046_v23 }
 0x19d   : > { %1879 = vmatmul.f32.gmra.mxu3 %v1302_v51  ;;  %1791 = vmatmul.f32.gmra.mxu2 %v3069_v44 }
 0x1a4   : > { %1701 = vmatmul.f32.gmra.mxu1 %v3058_v45  ;;  %1969 = vmatmul.f32.gmra.mxu0 %v3058_v45 }
 0x1a5   : > { %1882 = vmatmul.f32.gmra.mxu3 %v1559_v30  ;;  %1794 = vmatmul.f32.gmra.mxu2 %v1739_v61 }
 0x1ac   : > { %1704 = vmatmul.f32.gmra.mxu1 %v1285_v19  ;;  %1972 = vmatmul.f32.gmra.mxu0 %v1285_v19 }
 0x1ad   : > { %1885 = vmatmul.f32.gmra.mxu3 %v1830_v12 }
 0x1b4   : > { %2044 = vmatmul.f32.vlgmr.msra.gmra.mxu1 %v3001_v2  ;;  %1975 = vmatmul.f32.gmra.mxu0 %v2395_v58 }
 0x1b7   : > { %v1417_v33 = vpop.f32.mrf.mxu2 }
 0x1b9   : > { %v1343_v54 = vpop.f32.mrf.mxu1  ;;  %v1594_v18 = vpop.f32.mrf.mxu0 }
 0x1bc   : > { %2047 = vmatmul.f32.gmra.mxu1 %v3018_v41 }
 0x1c0   : > { %v1507_v2 = vpop.f32.mrf.mxu3  ;;  %v1420_v41 = vpop.f32.mrf.mxu2 }
 0x1c1   : > { %v1346_v52 = vpop.f32.mrf.mxu1  ;;  %v1597_v53 = vpop.f32.mrf.mxu0 }
 0x1c4   : > { %2050 = vmatmul.f32.gmra.mxu1 %v3035_v47 }
 0x1c8   : > { %v1510_v47 = vpop.f32.mrf.mxu3  ;;  %v1423_v22 = vpop.f32.mrf.mxu2 }
 0x1c9   : > { %v3100_v14 = vpop.f32.mrf.mxu1  ;;  %v1600_v7 = vpop.f32.mrf.mxu0 }
 0x1cc   : > { %2053 = vmatmul.f32.gmra.mxu1 %v3050_v26 }
 0x1d0   : > { %v3111_v23 = vpop.f32.mrf.mxu3  ;;  %v3117_v26 = vpop.f32.mrf.mxu2 }
 0x1d1   : > { %v3103_v48 = vpop.f32.mrf.mxu1  ;;  %v3115_v4 = vpop.f32.mrf.mxu0 }
 0x1d4   : > { %2056 = vmatmul.f32.gmra.mxu1 %v3062_v46  ;;  %v3146_v46 = vld [vmem:[%s3236_s4] ss:$0 sm:$0xff] }
 0x1d5   : > { %v1341_v49 = vadd.f32 %v3146_v46, %v1340_v34  ;;  %v1344_v19 = vadd.f32 %v3146_v46, %v1343_v54  ;;  %v1347_v10 = vadd.f32 %v3146_v46, %v1346_v52 }
 0x1d7   : > { %v1446_v16 = vadd.f32 %v1414_v15, %v1341_v49  ;;  %v1447_v17 = vadd.f32 %v1417_v33, %v1344_v19  ;;  %v1448_v11 = vadd.f32 %v1420_v41, %v1347_v10 }
 0x1d8   : > { %v3119_v0 = vpop.f32.mrf.mxu3  ;;  %v3123_v8 = vpop.f32.mrf.mxu2 }
 0x1d9   : > { %v3106_v20 = vpop.f32.mrf.mxu1  ;;  %v3121_v50 = vpop.f32.mrf.mxu0  ;;  %v1536_v60 = vadd.f32 %v1504_v35, %v1446_v16  ;;  %v1537_v6 = vadd.f32 %v1507_v2, %v1447_v17  ;;  %v1538_v58 = vadd.f32 %v1510_v47, %v1448_v11  ;;  %v1350_v35 = vadd.f32 %v3146_v46, %v3100_v14 }
 0x1da   : > { %v1353_v14 = vadd.f32 %v3146_v46, %v3103_v48  ;;  %v1356_v17 = vadd.f32 %v3146_v46, %v3106_v20 }
 0x1db   : > { %v1626_v51 = vadd.f32 %v1594_v18, %v1536_v60  ;;  %v1627_v32 = vadd.f32 %v1597_v53, %v1537_v6  ;;  %v1628_v52 = vadd.f32 %v1600_v7, %v1538_v58 }
 0x1dc   : > { %2059 = vmatmul.f32.gmra.mxu1 %v3069_v44  ;;  %v1450_v19 = vadd.f32 %v3117_v26, %v1353_v14  ;;  %v1451_v26 = vadd.f32 %v3123_v8, %v1356_v17 }
 0x1e0   : > { %v3125_v63 = vpop.f32.mrf.mxu3  ;;  %v3129_v27 = vpop.f32.mrf.mxu2 }
 0x1e1   : > { %v3109_v21 = vpop.f32.mrf.mxu1  ;;  %v3127_v29 = vpop.f32.mrf.mxu0 }
 0x1e2   : > { %v1359_v20 = vadd.f32 %v3146_v46, %v3109_v21 }
 0x1e4   : > { %2062 = vmatmul.f32.gmra.mxu1 %v1739_v61 }
 0x1e8   : > { %v3131_v37 = vpop.f32.mrf.mxu3  ;;  %v3135_v13 = vpop.f32.mrf.mxu2 }
 0x1e9   : > { %v3113_v28 = vpop.f32.mrf.mxu1  ;;  %v3133_v1 = vpop.f32.mrf.mxu0 }
 0x1ea   : > { %v1362_v21 = vadd.f32 %v3146_v46, %v3113_v28 }
 0x1ec   : > { %2065 = vmatmul.f32.gmra.mxu1 %v2010_v36 }
 0x1f0   : > { %v3137_v45 = vpop.f32.mrf.mxu3  ;;  %v1774_v57 = vpop.f32.mrf.mxu2 }
 0x1f1   : > { %v1684_v56 = vpop.f32.mrf.mxu1  ;;  %v3141_v42 = vpop.f32.mrf.mxu0 }
 0x1f2   : > { %v1716_v30 = vadd.f32 %v1684_v56, %v1626_v51  ;;  %v1449_v56 = vadd.f32 %v1423_v22, %v1350_v35 }
 0x1f4   : > { %v1806_v55 = vadd.f32 %v1774_v57, %v1716_v30  ;;  %v1539_v41 = vadd.f32 %v3111_v23, %v1449_v56  ;;  %v1540_v23 = vadd.f32 %v3119_v0, %v1450_v19 }
 0x1f8   : > { %v1865_v59 = vpop.f32.mrf.mxu3  ;;  %v1777_v44 = vpop.f32.mrf.mxu2 }
 0x1f9   : > { %v1687_v39 = vpop.f32.mrf.mxu1  ;;  %v1955_v25 = vpop.f32.mrf.mxu0  ;;  %v1897_v38 = vadd.f32 %v1865_v59, %v1806_v55 }
 0x1fa   : > { %v1717_v61 = vadd.f32 %v1687_v39, %v1627_v32  ;;  %v1541_v32 = vadd.f32 %v3125_v63, %v1451_v26 }
 0x1fb   : > { %v1987_v54 = vadd.f32 %v1955_v25, %v1897_v38  ;;  %v1629_v25 = vadd.f32 %v3115_v4, %v1539_v41  ;;  %v1630_v4 = vadd.f32 %v3121_v50, %v1540_v23 }
 0x1fc   : > { %v1807_v18 = vadd.f32 %v1777_v44, %v1717_v61  ;;  %v1631_v50 = vadd.f32 %v3127_v29, %v1541_v32 }
 0x200   : > { %v1868_v3 = vpop.f32.mrf.mxu3  ;;  %v1780_v12 = vpop.f32.mrf.mxu2 }
 0x201   : > { %v1690_v31 = vpop.f32.mrf.mxu1  ;;  %v1958_v9 = vpop.f32.mrf.mxu0  ;;  %v1898_v36 = vadd.f32 %v1868_v3, %v1807_v18 }
 0x202   : > { %v1718_v49 = vadd.f32 %v1690_v31, %v1628_v52 }
 0x203   : > { %v1988_v47 = vadd.f32 %v1958_v9, %v1898_v36 }
 0x204   : > { %v1808_v16 = vadd.f32 %v1780_v12, %v1718_v49 }
 0x208   : > { %v1871_v34 = vpop.f32.mrf.mxu3  ;;  %v1783_v39 = vpop.f32.mrf.mxu2 }
 0x209   : > { %v1693_v43 = vpop.f32.mrf.mxu1  ;;  %v1961_v2 = vpop.f32.mrf.mxu0  ;;  %v1899_v22 = vadd.f32 %v1871_v34, %v1808_v16 }
 0x20a   : > { %v1719_v51 = vadd.f32 %v1693_v43, %v1629_v25 }
 0x20b   : > { %v1989_v44 = vadd.f32 %v1961_v2, %v1899_v22 }
 0x20c   : > { %v1809_v48 = vadd.f32 %v1783_v39, %v1719_v51 }
 0x210   : > { %v1874_v57 = vpop.f32.mrf.mxu3  ;;  %v1786_v30 = vpop.f32.mrf.mxu2 }
 0x211   : > { %v3139_v40 = vpop.f32.mrf.mxu1  ;;  %v1964_v60 = vpop.f32.mrf.mxu0  ;;  %v1900_v10 = vadd.f32 %v1874_v57, %v1809_v48 }
 0x212   : > { %v1720_v43 = vadd.f32 %v3139_v40, %v1630_v4  ;;  %v1452_v40 = vadd.f32 %v3129_v27, %v1359_v20  ;;  %v1453_v27 = vadd.f32 %v3135_v13, %v1362_v21 }
 0x213   : > { %v1990_v38 = vadd.f32 %v1964_v60, %v1900_v10 }
 0x214   : > { %v1810_v61 = vadd.f32 %v1786_v30, %v1720_v43  ;;  %v1542_v63 = vadd.f32 %v3131_v37, %v1452_v40  ;;  %v1543_v49 = vadd.f32 %v3137_v45, %v1453_v27 }
 0x216   : > { %v1632_v52 = vadd.f32 %v3133_v1, %v1542_v63  ;;  %v1633_v1 = vadd.f32 %v3141_v42, %v1543_v49 }
 0x218   : > { %v1877_v9 = vpop.f32.mrf.mxu3  ;;  %v1789_v58 = vpop.f32.mrf.mxu2 }
 0x219   : > { %v3148_v62 = vpop.f32.mrf.mxu1  ;;  %v1967_v0 = vpop.f32.mrf.mxu0  ;;  %v1901_v34 = vadd.f32 %v1877_v9, %v1810_v61 }
 0x21b   : > { %v1991_v35 = vadd.f32 %v1967_v0, %v1901_v34 }
 0x220   : > { %v1880_v8 = vpop.f32.mrf.mxu3  ;;  %v1792_v56 = vpop.f32.mrf.mxu2 }
 0x221   : > { %v3151_v5 = vpop.f32.mrf.mxu1  ;;  %v1970_v18 = vpop.f32.mrf.mxu0 }
 0x228   : > { %v1883_v37 = vpop.f32.mrf.mxu3  ;;  %v1795_v14 = vpop.f32.mrf.mxu2 }
 0x229   : > { %v3154_v24 = vpop.f32.mrf.mxu1  ;;  %v1973_v39 = vpop.f32.mrf.mxu0 }
 0x22a   : > { %v1723_v13 = vadd.f32 %v3154_v24, %v1633_v1 }
 0x22c   : > { %v1813_v45 = vadd.f32 %v1795_v14, %v1723_v13 }
 0x230   : > { %v1886_v16 = vpop.f32.mrf.mxu3 }
 0x231   : > { %v2045_v15 = vpop.f32.mrf.mxu1  ;;  %v1904_v22 = vadd.f32 %v1886_v16, %v1813_v45  ;;  %v1976_v60 = vpop.f32.mrf.mxu0 }
 0x232   : > { %v2077_v33 = vadd.f32 %v2045_v15, %v1987_v54  ;;  %v1721_v15 = vadd.f32 %v3148_v62, %v1631_v50  ;;  %v1722_v62 = vadd.f32 %v3151_v5, %v1632_v52 }
 0x233   : > { %v1994_v42 = vadd.f32 %v1976_v60, %v1904_v22 }
 0x234   : > { %v2101_v53 = vmax.f32 %v2077_v33, 0.0  ;;  %v1811_v2 = vadd.f32 %v1789_v58, %v1721_v15  ;;  %v1812_v28 = vadd.f32 %v1792_v56, %v1722_v62 }
 0x236   : > { %2109 = vst [vmem:[%s3162_s9] sm:$0xff] %v2101_v53  ;;  %v1902_v36 = vadd.f32 %v1880_v8, %v1811_v2  ;;  %v1903_v57 = vadd.f32 %v1883_v37, %v1812_v28 }
 0x238   : > { %v1992_v41 = vadd.f32 %v1970_v18, %v1902_v36  ;;  %v1993_v5 = vadd.f32 %v1973_v39, %v1903_v57 }
 0x239   : > { %v2048_v59 = vpop.f32.mrf.mxu1 }
 0x23a   : > { %v2078_v7 = vadd.f32 %v2048_v59, %v1988_v47 }
 0x23c   : > { %v2102_v31 = vmax.f32 %v2078_v7, 0.0 }
 0x23e   : > { %2110 = vst [vmem:[%s3162_s9 + $0x8] sm:$0xff] %v2102_v31 }
 0x241   : > { %v2051_v3 = vpop.f32.mrf.mxu1 }
 0x242   : > { %v2079_v6 = vadd.f32 %v2051_v3, %v1989_v44 }
 0x244   : > { %v2103_v55 = vmax.f32 %v2079_v6, 0.0 }
 0x246   : > { %2111 = vst [vmem:[%s3162_s9 + $0x10] sm:$0xff] %v2103_v55 }
 0x249   : > { %v2054_v11 = vpop.f32.mrf.mxu1 }
 0x24a   : > { %v2080_v12 = vadd.f32 %v2054_v11, %v1990_v38 }
 0x24c   : > { %v2104_v54 = vmax.f32 %v2080_v12, 0.0 }
 0x24e   : > { %2112 = vst [vmem:[%s3162_s9 + $0x18] sm:$0xff] %v2104_v54 }
 0x251   : > { %v2057_v33 = vpop.f32.mrf.mxu1 }
 0x252   : > { %v2081_v29 = vadd.f32 %v2057_v33, %v1991_v35 }
 0x254   : > { %v2105_v53 = vmax.f32 %v2081_v29, 0.0 }
 0x256   : > { %2113 = vst [vmem:[%s3162_s9 + $0x20] sm:$0xff] %v2105_v53 }
 0x259   : > { %v2060_v47 = vpop.f32.mrf.mxu1 }
 0x25a   : > { %v2082_v46 = vadd.f32 %v2060_v47, %v1992_v41 }
 0x25c   : > { %v2106_v59 = vmax.f32 %v2082_v46, 0.0 }
 0x25e   : > { %2114 = vst [vmem:[%s3162_s9 + $0x28] sm:$0xff] %v2106_v59 }
 0x261   : > { %v2063_v7 = vpop.f32.mrf.mxu1 }
 0x262   : > { %v2083_v25 = vadd.f32 %v2063_v7, %v1993_v5 }
 0x264   : > { %v2107_v31 = vmax.f32 %v2083_v25, 0.0 }
 0x266   : > { %2115 = vst [vmem:[%s3162_s9 + $0x30] sm:$0xff] %v2107_v31 }
 0x269   : > { %v2066_v24 = vpop.f32.mrf.mxu1 }
 0x26a   : > { %v2084_v19 = vadd.f32 %v2066_v24, %v1994_v42 }
 0x26c   : > { %v2108_v51 = vmax.f32 %v2084_v19, 0.0 }
 0x26e   : > { %2116 = vst [vmem:[%s3162_s9 + $0x38] sm:$0xff] %v2108_v51 }
 0x26f   : > { %2453 = shalt.err (!%p2450_p8)
}
 0x270   : > { %s2498_s7 = smov 128   ;;  %s2499_s8 = smov 8  }
 0x271   : > { %2342 = dma.vmem_to_hbm [thread:$0]  (%p2568_p5), %s2131_s14, 1024, %s2133_s15, %s2118_s22, %s2498_s7, %s2498_s7, %s2499_s8  }
 0x272 PF: > { %p2354_p9 = scmp.ge.s32.totalorder %s2492_s21, 2  ;;  %s2147_s9 = sand.u32 1, %s2480_s18  }
 0x273   : > { %s2148_s10 = scalar_lea.sflag [#allocation7], %s2147_s9 }
 0x274   : > { %p2349_p10 = pnand %p2354_p9, %p2572_p6 }
 0x276   : > { %p2350_p11 = pneg %p2349_p10 }
 0x278   : > { %2475 = dma.done.wait (%p2350_p11), %s2148_s10, 1024  }
 0x279   : > { %2477 = vsyncadd (%p2350_p11), %s2148_s10, 4294966272  ;;  %p16_p12 = scmp.ge.s32.totalorder %s2555_s24, 4   ;;  %s3240_s18 = smov %s2484_s19 }
 0x27a   : > { %s3241_s19 = smov %s2488_s20  ;;  %s3242_s20 = smov %s2566_s27 }
 0x27b   : > { %s3243_s21 = smov %s2555_s24  ;;  %18 = sbr.rel (!%p16_p12) target bundleno = 4 (0x4), region = 105 }
 0x280   :  { %2154 = vsyncpa [#allocation6], 1 }
 0x281   :  { %2156 = vsyncpa [#allocation6 + $0x1], 1 }
 0x282   :  { %2157 = vsyncpa [#allocation7], 1 }
 0x283   :  { %2159 = vsyncpa [#allocation7 + $0x1], 1 }

</bundles_post_ra>
